<compile_context>
chip_gen: v7x
topology: tpu7x:2x2x1
jax: 0.10.0
libtpu: 0.0.40
codegen_flags: <defaults>
</compile_context>

<pallas_src>
import jax
import jax.numpy as jnp
from jax.experimental import pallas as pl
from jax.experimental.pallas import tpu as pltpu


def _make_spatial_attention_kernel(C, H, W, K, pad):
    Hp = H + 2 * pad
    Wp = W + 2 * pad
    inv_c = 1.0 / float(C)

    def kernel(x_ref, w_ref, o_ref, pad_ref):
        # x_ref:   (1, C, H, W)   one batch of the input (W on lanes)
        # w_ref:   (2*K*K, W)     conv weights, each scalar pre-broadcast over W lanes
        # o_ref:   (1, H, W)      sigmoid(conv(cat[mean, max])) for this batch
        # pad_ref: (2, Hp, Wp)    VMEM scratch: zero-padded [avg, max] planes

        # ---- channel-wise mean & max (fused, VPU elementwise over C) --------
        x0 = x_ref[0, 0].astype(jnp.float32)
        s = x0
        m = x0
        for c in range(1, C):
            xc = x_ref[0, c].astype(jnp.float32)
            s = s + xc
            m = jnp.maximum(m, xc)
        avg = s * inv_c

        # ---- build zero-padded planes on-chip (no HBM pad pass) -------------
        # Zero every step (grid axis is "parallel": each core owns its scratch).
        pad_ref[...] = jnp.zeros_like(pad_ref)
        pad_ref[0, pad:pad + H, pad:pad + W] = avg
        pad_ref[1, pad:pad + H, pad:pad + W] = m

        # ---- KxK conv over the 2-channel map as shifted-tap vector FMAs -----
        acc = jnp.zeros((H, W), dtype=jnp.float32)
        for c in range(2):
            for kh in range(K):
                for kw in range(K):
                    t = (c * K + kh) * K + kw
                    w_row = w_ref[t:t + 1, :]                 # (1, W) broadcast weight
                    tap = pad_ref[c, kh:kh + H, kw:kw + W]    # (H, W) shifted window
                    acc = acc + w_row * tap

        # ---- sigmoid epilogue in f32 -----------------------------------------
        y = 1.0 / (1.0 + jnp.exp(-acc))
        o_ref[0] = y.astype(o_ref.dtype)

    return kernel


def spatial_attention(x_nchw, weight_oihw, *, kernel_size=7):
    """Forward of SpatialAttention.

    x_nchw:      (N, C, H, W)
    weight_oihw: (1, 2, K, K)  -- conv1.weight (no bias)
    returns:     (N, 1, H, W)
    """
    assert kernel_size in (3, 7), "kernel size must be 3 or 7"
    pad = 3 if kernel_size == 7 else 1
    N, C, H, W = x_nchw.shape
    Cout, Cin, KH, KW = weight_oihw.shape
    assert Cout == 1 and Cin == 2 and KH == kernel_size and KW == kernel_size

    K = kernel_size
    Hp, Wp = H + 2 * pad, W + 2 * pad

    # Flatten weights in (channel, kh, kw) order, pre-broadcast each scalar
    # across W lanes so the per-tap multiply inside the kernel is a vector op.
    w_flat = weight_oihw.astype(jnp.float32).reshape(2 * K * K)
    w_bcast = jnp.broadcast_to(w_flat[:, None], (2 * K * K, W))

    kernel = _make_spatial_attention_kernel(C, H, W, K, pad)

    out = pl.pallas_call(
        kernel,
        out_shape=jax.ShapeDtypeStruct((N, H, W), jnp.float32),
        grid_spec=pltpu.PrefetchScalarGridSpec(
            num_scalar_prefetch=0,
            grid=(N,),
            in_specs=[
                pl.BlockSpec((1, C, H, W), lambda b: (b, 0, 0, 0)),
                pl.BlockSpec((2 * K * K, W), lambda b: (0, 0)),
            ],
            out_specs=pl.BlockSpec((1, H, W), lambda b: (b, 0, 0)),
            scratch_shapes=[pltpu.VMEM((2, Hp, Wp), jnp.float32)],
        ),
        compiler_params=pltpu.CompilerParams(
            dimension_semantics=("parallel",)),
    )(x_nchw, w_bcast)

    # TODO(synk): for large feature maps add an H-tile grid axis with a +/-pad
    # halo (Element-offset index_map) so v7x's 2 TensorCores / 64 MiB VMEM get
    # enough parallel grid steps; at demo sizes one image per step is fine.
    return out.reshape(N, 1, H, W)


def _reference(x_nchw, weight_oihw, *, kernel_size=7):
    """Pure-JAX reference of the PyTorch forward for a sanity check."""
    pad = 3 if kernel_size == 7 else 1
    avg = jnp.mean(x_nchw, axis=1, keepdims=True)
    mx = jnp.max(x_nchw, axis=1, keepdims=True)
    xc = jnp.concatenate([avg, mx], axis=1).astype(jnp.float32)
    y = jax.lax.conv_general_dilated(
        xc, weight_oihw.astype(jnp.float32),
        window_strides=(1, 1), padding=[(pad, pad), (pad, pad)],
        dimension_numbers=("NCHW", "OIHW", "NCHW"))
    return jax.nn.sigmoid(y)


if __name__ == "__main__":
    # small shapes consistent with the module: batch=2, channels=4, 16x16, k=7
    N, C, H, W = 2, 4, 16, 16
    K = 7

    key = jax.random.PRNGKey(0)
    kx, kw = jax.random.split(key, 2)

    x = jax.random.normal(kx, (N, C, H, W), dtype=jnp.float32)
    weight = 0.1 * jax.random.normal(kw, (1, 2, K, K), dtype=jnp.float32)

    out = spatial_attention(x, weight, kernel_size=K)
    out = jax.block_until_ready(out)

    ref = _reference(x, weight, kernel_size=K)
    assert out.shape == (N, 1, H, W)
    assert jnp.allclose(out, ref, atol=1e-4, rtol=1e-4)

    print("KERNEL_OK")
</pallas_src>

<mosaic_0001>
module attributes {stable_mosaic.version = 11 : i64} {
  func.func @kernel(%arg0: i32, %arg1: memref<1x4x16x16xf32, #tpu.memory_space<vmem>>, %arg2: memref<98x16xf32, #tpu.memory_space<vmem>>, %arg3: memref<1x16x16xf32, #tpu.memory_space<vmem>>, %arg4: memref<2x22x22xf32, #tpu.memory_space<vmem>>) attributes {dimension_semantics = [#tpu.dimension_semantics<parallel>], iteration_bounds = array<i64: 2>, scalar_prefetch = 0 : i64, scratch_operands = 1 : i64, tpu.core_type = #tpu.core_type<tc>, window_params = [{transform_indices = @transform_0, window_bounds = array<i64: 1, 4, 16, 16>}, {pipeline_mode = #tpu.pipeline_mode<synchronous>, transform_indices = @transform_1, window_bounds = array<i64: 98, 16>}, {transform_indices = @transform_2, window_bounds = array<i64: 1, 16, 16>}]} {
    %c0 = arith.constant 0 : index
    %c0_0 = arith.constant 0 : index
    %c0_1 = arith.constant 0 : index
    %c0_2 = arith.constant 0 : index
    %0 = vector.load %arg1[%c0, %c0_0, %c0_1, %c0_2] : memref<1x4x16x16xf32, #tpu.memory_space<vmem>>, vector<1x1x16x16xf32>
    %1 = vector.shape_cast %0 : vector<1x1x16x16xf32> to vector<16x16xf32>
    %c0_3 = arith.constant 0 : index
    %c1 = arith.constant 1 : index
    %c0_4 = arith.constant 0 : index
    %c0_5 = arith.constant 0 : index
    %2 = vector.load %arg1[%c0_3, %c1, %c0_4, %c0_5] : memref<1x4x16x16xf32, #tpu.memory_space<vmem>>, vector<1x1x16x16xf32>
    %3 = vector.shape_cast %2 : vector<1x1x16x16xf32> to vector<16x16xf32>
    %4 = arith.addf %1, %3 : vector<16x16xf32>
    %5 = arith.maximumf %1, %3 : vector<16x16xf32>
    %c0_6 = arith.constant 0 : index
    %c2 = arith.constant 2 : index
    %c0_7 = arith.constant 0 : index
    %c0_8 = arith.constant 0 : index
    %6 = vector.load %arg1[%c0_6, %c2, %c0_7, %c0_8] : memref<1x4x16x16xf32, #tpu.memory_space<vmem>>, vector<1x1x16x16xf32>
    %7 = vector.shape_cast %6 : vector<1x1x16x16xf32> to vector<16x16xf32>
    %8 = arith.addf %4, %7 : vector<16x16xf32>
    %9 = arith.maximumf %5, %7 : vector<16x16xf32>
    %c0_9 = arith.constant 0 : index
    %c3 = arith.constant 3 : index
    %c0_10 = arith.constant 0 : index
    %c0_11 = arith.constant 0 : index
    %10 = vector.load %arg1[%c0_9, %c3, %c0_10, %c0_11] : memref<1x4x16x16xf32, #tpu.memory_space<vmem>>, vector<1x1x16x16xf32>
    %11 = vector.shape_cast %10 : vector<1x1x16x16xf32> to vector<16x16xf32>
    %12 = arith.addf %8, %11 : vector<16x16xf32>
    %13 = arith.maximumf %9, %11 : vector<16x16xf32>
    %cst = arith.constant 2.500000e-01 : f32
    %14 = vector.broadcast %cst : f32 to vector<16x16xf32>
    %15 = arith.mulf %12, %14 : vector<16x16xf32>
    %cst_12 = arith.constant 0.000000e+00 : f32
    %16 = vector.broadcast %cst_12 : f32 to vector<2x22x22xf32>
    %c0_13 = arith.constant 0 : index
    %c0_14 = arith.constant 0 : index
    %c0_15 = arith.constant 0 : index
    %17 = vector.load %arg4[%c0_13, %c0_14, %c0_15] : memref<2x22x22xf32, #tpu.memory_space<vmem>>, vector<2x22x22xf32>
    tpu.vector_store %arg4[%c0_13, %c0_14, %c0_15], %16 {strides = array<i32>} : memref<2x22x22xf32, #tpu.memory_space<vmem>>, vector<2x22x22xf32>,
    %c0_16 = arith.constant 0 : index
    %c3_17 = arith.constant 3 : index
    %c3_18 = arith.constant 3 : index
    %18 = vector.load %arg4[%c0_16, %c3_17, %c3_18] : memref<2x22x22xf32, #tpu.memory_space<vmem>>, vector<1x16x16xf32>
    %19 = vector.shape_cast %18 : vector<1x16x16xf32> to vector<16x16xf32>
    %20 = vector.shape_cast %15 : vector<16x16xf32> to vector<1x16x16xf32>
    tpu.vector_store %arg4[%c0_16, %c3_17, %c3_18], %20 {strides = array<i32>} : memref<2x22x22xf32, #tpu.memory_space<vmem>>, vector<1x16x16xf32>,
    %c1_19 = arith.constant 1 : index
    %c3_20 = arith.constant 3 : index
    %c3_21 = arith.constant 3 : index
    %21 = vector.load %arg4[%c1_19, %c3_20, %c3_21] : memref<2x22x22xf32, #tpu.memory_space<vmem>>, vector<1x16x16xf32>
    %22 = vector.shape_cast %21 : vector<1x16x16xf32> to vector<16x16xf32>
    %23 = vector.shape_cast %13 : vector<16x16xf32> to vector<1x16x16xf32>
    tpu.vector_store %arg4[%c1_19, %c3_20, %c3_21], %23 {strides = array<i32>} : memref<2x22x22xf32, #tpu.memory_space<vmem>>, vector<1x16x16xf32>,
    %cst_22 = arith.constant 0.000000e+00 : f32
    %24 = vector.broadcast %cst_22 : f32 to vector<16x16xf32>
    %c0_23 = arith.constant 0 : index
    %c0_24 = arith.constant 0 : index
    %25 = vector.load %arg2[%c0_23, %c0_24] : memref<98x16xf32, #tpu.memory_space<vmem>>, vector<1x16xf32>
    %c0_25 = arith.constant 0 : index
    %c0_26 = arith.constant 0 : index
    %c0_27 = arith.constant 0 : index
    %26 = vector.load %arg4[%c0_25, %c0_26, %c0_27] : memref<2x22x22xf32, #tpu.memory_space<vmem>>, vector<1x16x16xf32>
    %27 = vector.shape_cast %26 : vector<1x16x16xf32> to vector<16x16xf32>
    %28 = vector.broadcast %25 : vector<1x16xf32> to vector<16x16xf32>
    %29 = arith.mulf %28, %27 : vector<16x16xf32>
    %30 = arith.addf %24, %29 : vector<16x16xf32>
    %c1_28 = arith.constant 1 : index
    %c0_29 = arith.constant 0 : index
    %31 = vector.load %arg2[%c1_28, %c0_29] : memref<98x16xf32, #tpu.memory_space<vmem>>, vector<1x16xf32>
    %c0_30 = arith.constant 0 : index
    %c0_31 = arith.constant 0 : index
    %c1_32 = arith.constant 1 : index
    %32 = vector.load %arg4[%c0_30, %c0_31, %c1_32] : memref<2x22x22xf32, #tpu.memory_space<vmem>>, vector<1x16x16xf32>
    %33 = vector.shape_cast %32 : vector<1x16x16xf32> to vector<16x16xf32>
    %34 = vector.broadcast %31 : vector<1x16xf32> to vector<16x16xf32>
    %35 = arith.mulf %34, %33 : vector<16x16xf32>
    %36 = arith.addf %30, %35 : vector<16x16xf32>
    %c2_33 = arith.constant 2 : index
    %c0_34 = arith.constant 0 : index
    %37 = vector.load %arg2[%c2_33, %c0_34] : memref<98x16xf32, #tpu.memory_space<vmem>>, vector<1x16xf32>
    %c0_35 = arith.constant 0 : index
    %c0_36 = arith.constant 0 : index
    %c2_37 = arith.constant 2 : index
    %38 = vector.load %arg4[%c0_35, %c0_36, %c2_37] : memref<2x22x22xf32, #tpu.memory_space<vmem>>, vector<1x16x16xf32>
    %39 = vector.shape_cast %38 : vector<1x16x16xf32> to vector<16x16xf32>
    %40 = vector.broadcast %37 : vector<1x16xf32> to vector<16x16xf32>
    %41 = arith.mulf %40, %39 : vector<16x16xf32>
    %42 = arith.addf %36, %41 : vector<16x16xf32>
    %c3_38 = arith.constant 3 : index
    %c0_39 = arith.constant 0 : index
    %43 = vector.load %arg2[%c3_38, %c0_39] : memref<98x16xf32, #tpu.memory_space<vmem>>, vector<1x16xf32>
    %c0_40 = arith.constant 0 : index
    %c0_41 = arith.constant 0 : index
    %c3_42 = arith.constant 3 : index
    %44 = vector.load %arg4[%c0_40, %c0_41, %c3_42] : memref<2x22x22xf32, #tpu.memory_space<vmem>>, vector<1x16x16xf32>
    %45 = vector.shape_cast %44 : vector<1x16x16xf32> to vector<16x16xf32>
    %46 = vector.broadcast %43 : vector<1x16xf32> to vector<16x16xf32>
    %47 = arith.mulf %46, %45 : vector<16x16xf32>
    %48 = arith.addf %42, %47 : vector<16x16xf32>
    %c4 = arith.constant 4 : index
    %c0_43 = arith.constant 0 : index
    %49 = vector.load %arg2[%c4, %c0_43] : memref<98x16xf32, #tpu.memory_space<vmem>>, vector<1x16xf32>
    %c0_44 = arith.constant 0 : index
    %c0_45 = arith.constant 0 : index
    %c4_46 = arith.constant 4 : index
    %50 = vector.load %arg4[%c0_44, %c0_45, %c4_46] : memref<2x22x22xf32, #tpu.memory_space<vmem>>, vector<1x16x16xf32>
    %51 = vector.shape_cast %50 : vector<1x16x16xf32> to vector<16x16xf32>
    %52 = vector.broadcast %49 : vector<1x16xf32> to vector<16x16xf32>
    %53 = arith.mulf %52, %51 : vector<16x16xf32>
    %54 = arith.addf %48, %53 : vector<16x16xf32>
    %c5 = arith.constant 5 : index
    %c0_47 = arith.constant 0 : index
    %55 = vector.load %arg2[%c5, %c0_47] : memref<98x16xf32, #tpu.memory_space<vmem>>, vector<1x16xf32>
    %c0_48 = arith.constant 0 : index
    %c0_49 = arith.constant 0 : index
    %c5_50 = arith.constant 5 : index
    %56 = vector.load %arg4[%c0_48, %c0_49, %c5_50] : memref<2x22x22xf32, #tpu.memory_space<vmem>>, vector<1x16x16xf32>
    %57 = vector.shape_cast %56 : vector<1x16x16xf32> to vector<16x16xf32>
    %58 = vector.broadcast %55 : vector<1x16xf32> to vector<16x16xf32>
    %59 = arith.mulf %58, %57 : vector<16x16xf32>
    %60 = arith.addf %54, %59 : vector<16x16xf32>
    %c6 = arith.constant 6 : index
    %c0_51 = arith.constant 0 : index
    %61 = vector.load %arg2[%c6, %c0_51] : memref<98x16xf32, #tpu.memory_space<vmem>>, vector<1x16xf32>
    %c0_52 = arith.constant 0 : index
    %c0_53 = arith.constant 0 : index
    %c6_54 = arith.constant 6 : index
    %62 = vector.load %arg4[%c0_52, %c0_53, %c6_54] : memref<2x22x22xf32, #tpu.memory_space<vmem>>, vector<1x16x16xf32>
    %63 = vector.shape_cast %62 : vector<1x16x16xf32> to vector<16x16xf32>
    %64 = vector.broadcast %61 : vector<1x16xf32> to vector<16x16xf32>
    %65 = arith.mulf %64, %63 : vector<16x16xf32>
    %66 = arith.addf %60, %65 : vector<16x16xf32>
    %c7 = arith.constant 7 : index
    %c0_55 = arith.constant 0 : index
    %67 = vector.load %arg2[%c7, %c0_55] : memref<98x16xf32, #tpu.memory_space<vmem>>, vector<1x16xf32>
    %c0_56 = arith.constant 0 : index
    %c1_57 = arith.constant 1 : index
    %c0_58 = arith.constant 0 : index
    %68 = vector.load %arg4[%c0_56, %c1_57, %c0_58] : memref<2x22x22xf32, #tpu.memory_space<vmem>>, vector<1x16x16xf32>
    %69 = vector.shape_cast %68 : vector<1x16x16xf32> to vector<16x16xf32>
    %70 = vector.broadcast %67 : vector<1x16xf32> to vector<16x16xf32>
    %71 = arith.mulf %70, %69 : vector<16x16xf32>
    %72 = arith.addf %66, %71 : vector<16x16xf32>
    %c8 = arith.constant 8 : index
    %c0_59 = arith.constant 0 : index
    %73 = vector.load %arg2[%c8, %c0_59] : memref<98x16xf32, #tpu.memory_space<vmem>>, vector<1x16xf32>
    %c0_60 = arith.constant 0 : index
    %c1_61 = arith.constant 1 : index
    %c1_62 = arith.constant 1 : index
    %74 = vector.load %arg4[%c0_60, %c1_61, %c1_62] : memref<2x22x22xf32, #tpu.memory_space<vmem>>, vector<1x16x16xf32>
    %75 = vector.shape_cast %74 : vector<1x16x16xf32> to vector<16x16xf32>
    %76 = vector.broadcast %73 : vector<1x16xf32> to vector<16x16xf32>
    %77 = arith.mulf %76, %75 : vector<16x16xf32>
    %78 = arith.addf %72, %77 : vector<16x16xf32>
    %c9 = arith.constant 9 : index
    %c0_63 = arith.constant 0 : index
    %79 = vector.load %arg2[%c9, %c0_63] : memref<98x16xf32, #tpu.memory_space<vmem>>, vector<1x16xf32>
    %c0_64 = arith.constant 0 : index
    %c1_65 = arith.constant 1 : index
    %c2_66 = arith.constant 2 : index
    %80 = vector.load %arg4[%c0_64, %c1_65, %c2_66] : memref<2x22x22xf32, #tpu.memory_space<vmem>>, vector<1x16x16xf32>
    %81 = vector.shape_cast %80 : vector<1x16x16xf32> to vector<16x16xf32>
    %82 = vector.broadcast %79 : vector<1x16xf32> to vector<16x16xf32>
    %83 = arith.mulf %82, %81 : vector<16x16xf32>
    %84 = arith.addf %78, %83 : vector<16x16xf32>
    %c10 = arith.constant 10 : index
    %c0_67 = arith.constant 0 : index
    %85 = vector.load %arg2[%c10, %c0_67] : memref<98x16xf32, #tpu.memory_space<vmem>>, vector<1x16xf32>
    %c0_68 = arith.constant 0 : index
    %c1_69 = arith.constant 1 : index
    %c3_70 = arith.constant 3 : index
    %86 = vector.load %arg4[%c0_68, %c1_69, %c3_70] : memref<2x22x22xf32, #tpu.memory_space<vmem>>, vector<1x16x16xf32>
    %87 = vector.shape_cast %86 : vector<1x16x16xf32> to vector<16x16xf32>
    %88 = vector.broadcast %85 : vector<1x16xf32> to vector<16x16xf32>
    %89 = arith.mulf %88, %87 : vector<16x16xf32>
    %90 = arith.addf %84, %89 : vector<16x16xf32>
    %c11 = arith.constant 11 : index
    %c0_71 = arith.constant 0 : index
    %91 = vector.load %arg2[%c11, %c0_71] : memref<98x16xf32, #tpu.memory_space<vmem>>, vector<1x16xf32>
    %c0_72 = arith.constant 0 : index
    %c1_73 = arith.constant 1 : index
    %c4_74 = arith.constant 4 : index
    %92 = vector.load %arg4[%c0_72, %c1_73, %c4_74] : memref<2x22x22xf32, #tpu.memory_space<vmem>>, vector<1x16x16xf32>
    %93 = vector.shape_cast %92 : vector<1x16x16xf32> to vector<16x16xf32>
    %94 = vector.broadcast %91 : vector<1x16xf32> to vector<16x16xf32>
    %95 = arith.mulf %94, %93 : vector<16x16xf32>
    %96 = arith.addf %90, %95 : vector<16x16xf32>
    %c12 = arith.constant 12 : index
    %c0_75 = arith.constant 0 : index
    %97 = vector.load %arg2[%c12, %c0_75] : memref<98x16xf32, #tpu.memory_space<vmem>>, vector<1x16xf32>
    %c0_76 = arith.constant 0 : index
    %c1_77 = arith.constant 1 : index
    %c5_78 = arith.constant 5 : index
    %98 = vector.load %arg4[%c0_76, %c1_77, %c5_78] : memref<2x22x22xf32, #tpu.memory_space<vmem>>, vector<1x16x16xf32>
    %99 = vector.shape_cast %98 : vector<1x16x16xf32> to vector<16x16xf32>
    %100 = vector.broadcast %97 : vector<1x16xf32> to vector<16x16xf32>
    %101 = arith.mulf %100, %99 : vector<16x16xf32>
    %102 = arith.addf %96, %101 : vector<16x16xf32>
    %c13 = arith.constant 13 : index
    %c0_79 = arith.constant 0 : index
    %103 = vector.load %arg2[%c13, %c0_79] : memref<98x16xf32, #tpu.memory_space<vmem>>, vector<1x16xf32>
    %c0_80 = arith.constant 0 : index
    %c1_81 = arith.constant 1 : index
    %c6_82 = arith.constant 6 : index
    %104 = vector.load %arg4[%c0_80, %c1_81, %c6_82] : memref<2x22x22xf32, #tpu.memory_space<vmem>>, vector<1x16x16xf32>
    %105 = vector.shape_cast %104 : vector<1x16x16xf32> to vector<16x16xf32>
    %106 = vector.broadcast %103 : vector<1x16xf32> to vector<16x16xf32>
    %107 = arith.mulf %106, %105 : vector<16x16xf32>
    %108 = arith.addf %102, %107 : vector<16x16xf32>
    %c14 = arith.constant 14 : index
    %c0_83 = arith.constant 0 : index
    %109 = vector.load %arg2[%c14, %c0_83] : memref<98x16xf32, #tpu.memory_space<vmem>>, vector<1x16xf32>
    %c0_84 = arith.constant 0 : index
    %c2_85 = arith.constant 2 : index
    %c0_86 = arith.constant 0 : index
    %110 = vector.load %arg4[%c0_84, %c2_85, %c0_86] : memref<2x22x22xf32, #tpu.memory_space<vmem>>, vector<1x16x16xf32>
    %111 = vector.shape_cast %110 : vector<1x16x16xf32> to vector<16x16xf32>
    %112 = vector.broadcast %109 : vector<1x16xf32> to vector<16x16xf32>
    %113 = arith.mulf %112, %111 : vector<16x16xf32>
    %114 = arith.addf %108, %113 : vector<16x16xf32>
    %c15 = arith.constant 15 : index
    %c0_87 = arith.constant 0 : index
    %115 = vector.load %arg2[%c15, %c0_87] : memref<98x16xf32, #tpu.memory_space<vmem>>, vector<1x16xf32>
    %c0_88 = arith.constant 0 : index
    %c2_89 = arith.constant 2 : index
    %c1_90 = arith.constant 1 : index
    %116 = vector.load %arg4[%c0_88, %c2_89, %c1_90] : memref<2x22x22xf32, #tpu.memory_space<vmem>>, vector<1x16x16xf32>
    %117 = vector.shape_cast %116 : vector<1x16x16xf32> to vector<16x16xf32>
    %118 = vector.broadcast %115 : vector<1x16xf32> to vector<16x16xf32>
    %119 = arith.mulf %118, %117 : vector<16x16xf32>
    %120 = arith.addf %114, %119 : vector<16x16xf32>
    %c16 = arith.constant 16 : index
    %c0_91 = arith.constant 0 : index
    %121 = vector.load %arg2[%c16, %c0_91] : memref<98x16xf32, #tpu.memory_space<vmem>>, vector<1x16xf32>
    %c0_92 = arith.constant 0 : index
    %c2_93 = arith.constant 2 : index
    %c2_94 = arith.constant 2 : index
    %122 = vector.load %arg4[%c0_92, %c2_93, %c2_94] : memref<2x22x22xf32, #tpu.memory_space<vmem>>, vector<1x16x16xf32>
    %123 = vector.shape_cast %122 : vector<1x16x16xf32> to vector<16x16xf32>
    %124 = vector.broadcast %121 : vector<1x16xf32> to vector<16x16xf32>
    %125 = arith.mulf %124, %123 : vector<16x16xf32>
    %126 = arith.addf %120, %125 : vector<16x16xf32>
    %c17 = arith.constant 17 : index
    %c0_95 = arith.constant 0 : index
    %127 = vector.load %arg2[%c17, %c0_95] : memref<98x16xf32, #tpu.memory_space<vmem>>, vector<1x16xf32>
    %c0_96 = arith.constant 0 : index
    %c2_97 = arith.constant 2 : index
    %c3_98 = arith.constant 3 : index
    %128 = vector.load %arg4[%c0_96, %c2_97, %c3_98] : memref<2x22x22xf32, #tpu.memory_space<vmem>>, vector<1x16x16xf32>
    %129 = vector.shape_cast %128 : vector<1x16x16xf32> to vector<16x16xf32>
    %130 = vector.broadcast %127 : vector<1x16xf32> to vector<16x16xf32>
    %131 = arith.mulf %130, %129 : vector<16x16xf32>
    %132 = arith.addf %126, %131 : vector<16x16xf32>
    %c18 = arith.constant 18 : index
    %c0_99 = arith.constant 0 : index
    %133 = vector.load %arg2[%c18, %c0_99] : memref<98x16xf32, #tpu.memory_space<vmem>>, vector<1x16xf32>
    %c0_100 = arith.constant 0 : index
    %c2_101 = arith.constant 2 : index
    %c4_102 = arith.constant 4 : index
    %134 = vector.load %arg4[%c0_100, %c2_101, %c4_102] : memref<2x22x22xf32, #tpu.memory_space<vmem>>, vector<1x16x16xf32>
    %135 = vector.shape_cast %134 : vector<1x16x16xf32> to vector<16x16xf32>
    %136 = vector.broadcast %133 : vector<1x16xf32> to vector<16x16xf32>
    %137 = arith.mulf %136, %135 : vector<16x16xf32>
    %138 = arith.addf %132, %137 : vector<16x16xf32>
    %c19 = arith.constant 19 : index
    %c0_103 = arith.constant 0 : index
    %139 = vector.load %arg2[%c19, %c0_103] : memref<98x16xf32, #tpu.memory_space<vmem>>, vector<1x16xf32>
    %c0_104 = arith.constant 0 : index
    %c2_105 = arith.constant 2 : index
    %c5_106 = arith.constant 5 : index
    %140 = vector.load %arg4[%c0_104, %c2_105, %c5_106] : memref<2x22x22xf32, #tpu.memory_space<vmem>>, vector<1x16x16xf32>
    %141 = vector.shape_cast %140 : vector<1x16x16xf32> to vector<16x16xf32>
    %142 = vector.broadcast %139 : vector<1x16xf32> to vector<16x16xf32>
    %143 = arith.mulf %142, %141 : vector<16x16xf32>
    %144 = arith.addf %138, %143 : vector<16x16xf32>
    %c20 = arith.constant 20 : index
    %c0_107 = arith.constant 0 : index
    %145 = vector.load %arg2[%c20, %c0_107] : memref<98x16xf32, #tpu.memory_space<vmem>>, vector<1x16xf32>
    %c0_108 = arith.constant 0 : index
    %c2_109 = arith.constant 2 : index
    %c6_110 = arith.constant 6 : index
    %146 = vector.load %arg4[%c0_108, %c2_109, %c6_110] : memref<2x22x22xf32, #tpu.memory_space<vmem>>, vector<1x16x16xf32>
    %147 = vector.shape_cast %146 : vector<1x16x16xf32> to vector<16x16xf32>
    %148 = vector.broadcast %145 : vector<1x16xf32> to vector<16x16xf32>
    %149 = arith.mulf %148, %147 : vector<16x16xf32>
    %150 = arith.addf %144, %149 : vector<16x16xf32>
    %c21 = arith.constant 21 : index
    %c0_111 = arith.constant 0 : index
    %151 = vector.load %arg2[%c21, %c0_111] : memref<98x16xf32, #tpu.memory_space<vmem>>, vector<1x16xf32>
    %c0_112 = arith.constant 0 : index
    %c3_113 = arith.constant 3 : index
    %c0_114 = arith.constant 0 : index
    %152 = vector.load %arg4[%c0_112, %c3_113, %c0_114] : memref<2x22x22xf32, #tpu.memory_space<vmem>>, vector<1x16x16xf32>
    %153 = vector.shape_cast %152 : vector<1x16x16xf32> to vector<16x16xf32>
    %154 = vector.broadcast %151 : vector<1x16xf32> to vector<16x16xf32>
    %155 = arith.mulf %154, %153 : vector<16x16xf32>
    %156 = arith.addf %150, %155 : vector<16x16xf32>
    %c22 = arith.constant 22 : index
    %c0_115 = arith.constant 0 : index
    %157 = vector.load %arg2[%c22, %c0_115] : memref<98x16xf32, #tpu.memory_space<vmem>>, vector<1x16xf32>
    %c0_116 = arith.constant 0 : index
    %c3_117 = arith.constant 3 : index
    %c1_118 = arith.constant 1 : index
    %158 = vector.load %arg4[%c0_116, %c3_117, %c1_118] : memref<2x22x22xf32, #tpu.memory_space<vmem>>, vector<1x16x16xf32>
    %159 = vector.shape_cast %158 : vector<1x16x16xf32> to vector<16x16xf32>
    %160 = vector.broadcast %157 : vector<1x16xf32> to vector<16x16xf32>
    %161 = arith.mulf %160, %159 : vector<16x16xf32>
    %162 = arith.addf %156, %161 : vector<16x16xf32>
    %c23 = arith.constant 23 : index
    %c0_119 = arith.constant 0 : index
    %163 = vector.load %arg2[%c23, %c0_119] : memref<98x16xf32, #tpu.memory_space<vmem>>, vector<1x16xf32>
    %c0_120 = arith.constant 0 : index
    %c3_121 = arith.constant 3 : index
    %c2_122 = arith.constant 2 : index
    %164 = vector.load %arg4[%c0_120, %c3_121, %c2_122] : memref<2x22x22xf32, #tpu.memory_space<vmem>>, vector<1x16x16xf32>
    %165 = vector.shape_cast %164 : vector<1x16x16xf32> to vector<16x16xf32>
    %166 = vector.broadcast %163 : vector<1x16xf32> to vector<16x16xf32>
    %167 = arith.mulf %166, %165 : vector<16x16xf32>
    %168 = arith.addf %162, %167 : vector<16x16xf32>
    %c24 = arith.constant 24 : index
    %c0_123 = arith.constant 0 : index
    %169 = vector.load %arg2[%c24, %c0_123] : memref<98x16xf32, #tpu.memory_space<vmem>>, vector<1x16xf32>
    %c0_124 = arith.constant 0 : index
    %c3_125 = arith.constant 3 : index
    %c3_126 = arith.constant 3 : index
    %170 = vector.load %arg4[%c0_124, %c3_125, %c3_126] : memref<2x22x22xf32, #tpu.memory_space<vmem>>, vector<1x16x16xf32>
    %171 = vector.shape_cast %170 : vector<1x16x16xf32> to vector<16x16xf32>
    %172 = vector.broadcast %169 : vector<1x16xf32> to vector<16x16xf32>
    %173 = arith.mulf %172, %171 : vector<16x16xf32>
    %174 = arith.addf %168, %173 : vector<16x16xf32>
    %c25 = arith.constant 25 : index
    %c0_127 = arith.constant 0 : index
    %175 = vector.load %arg2[%c25, %c0_127] : memref<98x16xf32, #tpu.memory_space<vmem>>, vector<1x16xf32>
    %c0_128 = arith.constant 0 : index
    %c3_129 = arith.constant 3 : index
    %c4_130 = arith.constant 4 : index
    %176 = vector.load %arg4[%c0_128, %c3_129, %c4_130] : memref<2x22x22xf32, #tpu.memory_space<vmem>>, vector<1x16x16xf32>
    %177 = vector.shape_cast %176 : vector<1x16x16xf32> to vector<16x16xf32>
    %178 = vector.broadcast %175 : vector<1x16xf32> to vector<16x16xf32>
    %179 = arith.mulf %178, %177 : vector<16x16xf32>
    %180 = arith.addf %174, %179 : vector<16x16xf32>
    %c26 = arith.constant 26 : index
    %c0_131 = arith.constant 0 : index
    %181 = vector.load %arg2[%c26, %c0_131] : memref<98x16xf32, #tpu.memory_space<vmem>>, vector<1x16xf32>
    %c0_132 = arith.constant 0 : index
    %c3_133 = arith.constant 3 : index
    %c5_134 = arith.constant 5 : index
    %182 = vector.load %arg4[%c0_132, %c3_133, %c5_134] : memref<2x22x22xf32, #tpu.memory_space<vmem>>, vector<1x16x16xf32>
    %183 = vector.shape_cast %182 : vector<1x16x16xf32> to vector<16x16xf32>
    %184 = vector.broadcast %181 : vector<1x16xf32> to vector<16x16xf32>
    %185 = arith.mulf %184, %183 : vector<16x16xf32>
    %186 = arith.addf %180, %185 : vector<16x16xf32>
    %c27 = arith.constant 27 : index
    %c0_135 = arith.constant 0 : index
    %187 = vector.load %arg2[%c27, %c0_135] : memref<98x16xf32, #tpu.memory_space<vmem>>, vector<1x16xf32>
    %c0_136 = arith.constant 0 : index
    %c3_137 = arith.constant 3 : index
    %c6_138 = arith.constant 6 : index
    %188 = vector.load %arg4[%c0_136, %c3_137, %c6_138] : memref<2x22x22xf32, #tpu.memory_space<vmem>>, vector<1x16x16xf32>
    %189 = vector.shape_cast %188 : vector<1x16x16xf32> to vector<16x16xf32>
    %190 = vector.broadcast %187 : vector<1x16xf32> to vector<16x16xf32>
    %191 = arith.mulf %190, %189 : vector<16x16xf32>
    %192 = arith.addf %186, %191 : vector<16x16xf32>
    %c28 = arith.constant 28 : index
    %c0_139 = arith.constant 0 : index
    %193 = vector.load %arg2[%c28, %c0_139] : memref<98x16xf32, #tpu.memory_space<vmem>>, vector<1x16xf32>
    %c0_140 = arith.constant 0 : index
    %c4_141 = arith.constant 4 : index
    %c0_142 = arith.constant 0 : index
    %194 = vector.load %arg4[%c0_140, %c4_141, %c0_142] : memref<2x22x22xf32, #tpu.memory_space<vmem>>, vector<1x16x16xf32>
    %195 = vector.shape_cast %194 : vector<1x16x16xf32> to vector<16x16xf32>
    %196 = vector.broadcast %193 : vector<1x16xf32> to vector<16x16xf32>
    %197 = arith.mulf %196, %195 : vector<16x16xf32>
    %198 = arith.addf %192, %197 : vector<16x16xf32>
    %c29 = arith.constant 29 : index
    %c0_143 = arith.constant 0 : index
    %199 = vector.load %arg2[%c29, %c0_143] : memref<98x16xf32, #tpu.memory_space<vmem>>, vector<1x16xf32>
    %c0_144 = arith.constant 0 : index
    %c4_145 = arith.constant 4 : index
    %c1_146 = arith.constant 1 : index
    %200 = vector.load %arg4[%c0_144, %c4_145, %c1_146] : memref<2x22x22xf32, #tpu.memory_space<vmem>>, vector<1x16x16xf32>
    %201 = vector.shape_cast %200 : vector<1x16x16xf32> to vector<16x16xf32>
    %202 = vector.broadcast %199 : vector<1x16xf32> to vector<16x16xf32>
    %203 = arith.mulf %202, %201 : vector<16x16xf32>
    %204 = arith.addf %198, %203 : vector<16x16xf32>
    %c30 = arith.constant 30 : index
    %c0_147 = arith.constant 0 : index
    %205 = vector.load %arg2[%c30, %c0_147] : memref<98x16xf32, #tpu.memory_space<vmem>>, vector<1x16xf32>
    %c0_148 = arith.constant 0 : index
    %c4_149 = arith.constant 4 : index
    %c2_150 = arith.constant 2 : index
    %206 = vector.load %arg4[%c0_148, %c4_149, %c2_150] : memref<2x22x22xf32, #tpu.memory_space<vmem>>, vector<1x16x16xf32>
    %207 = vector.shape_cast %206 : vector<1x16x16xf32> to vector<16x16xf32>
    %208 = vector.broadcast %205 : vector<1x16xf32> to vector<16x16xf32>
    %209 = arith.mulf %208, %207 : vector<16x16xf32>
    %210 = arith.addf %204, %209 : vector<16x16xf32>
    %c31 = arith.constant 31 : index
    %c0_151 = arith.constant 0 : index
    %211 = vector.load %arg2[%c31, %c0_151] : memref<98x16xf32, #tpu.memory_space<vmem>>, vector<1x16xf32>
    %c0_152 = arith.constant 0 : index
    %c4_153 = arith.constant 4 : index
    %c3_154 = arith.constant 3 : index
    %212 = vector.load %arg4[%c0_152, %c4_153, %c3_154] : memref<2x22x22xf32, #tpu.memory_space<vmem>>, vector<1x16x16xf32>
    %213 = vector.shape_cast %212 : vector<1x16x16xf32> to vector<16x16xf32>
    %214 = vector.broadcast %211 : vector<1x16xf32> to vector<16x16xf32>
    %215 = arith.mulf %214, %213 : vector<16x16xf32>
    %216 = arith.addf %210, %215 : vector<16x16xf32>
    %c32 = arith.constant 32 : index
    %c0_155 = arith.constant 0 : index
    %217 = vector.load %arg2[%c32, %c0_155] : memref<98x16xf32, #tpu.memory_space<vmem>>, vector<1x16xf32>
    %c0_156 = arith.constant 0 : index
    %c4_157 = arith.constant 4 : index
    %c4_158 = arith.constant 4 : index
    %218 = vector.load %arg4[%c0_156, %c4_157, %c4_158] : memref<2x22x22xf32, #tpu.memory_space<vmem>>, vector<1x16x16xf32>
    %219 = vector.shape_cast %218 : vector<1x16x16xf32> to vector<16x16xf32>
    %220 = vector.broadcast %217 : vector<1x16xf32> to vector<16x16xf32>
    %221 = arith.mulf %220, %219 : vector<16x16xf32>
    %222 = arith.addf %216, %221 : vector<16x16xf32>
    %c33 = arith.constant 33 : index
    %c0_159 = arith.constant 0 : index
    %223 = vector.load %arg2[%c33, %c0_159] : memref<98x16xf32, #tpu.memory_space<vmem>>, vector<1x16xf32>
    %c0_160 = arith.constant 0 : index
    %c4_161 = arith.constant 4 : index
    %c5_162 = arith.constant 5 : index
    %224 = vector.load %arg4[%c0_160, %c4_161, %c5_162] : memref<2x22x22xf32, #tpu.memory_space<vmem>>, vector<1x16x16xf32>
    %225 = vector.shape_cast %224 : vector<1x16x16xf32> to vector<16x16xf32>
    %226 = vector.broadcast %223 : vector<1x16xf32> to vector<16x16xf32>
    %227 = arith.mulf %226, %225 : vector<16x16xf32>
    %228 = arith.addf %222, %227 : vector<16x16xf32>
    %c34 = arith.constant 34 : index
    %c0_163 = arith.constant 0 : index
    %229 = vector.load %arg2[%c34, %c0_163] : memref<98x16xf32, #tpu.memory_space<vmem>>, vector<1x16xf32>
    %c0_164 = arith.constant 0 : index
    %c4_165 = arith.constant 4 : index
    %c6_166 = arith.constant 6 : index
    %230 = vector.load %arg4[%c0_164, %c4_165, %c6_166] : memref<2x22x22xf32, #tpu.memory_space<vmem>>, vector<1x16x16xf32>
    %231 = vector.shape_cast %230 : vector<1x16x16xf32> to vector<16x16xf32>
    %232 = vector.broadcast %229 : vector<1x16xf32> to vector<16x16xf32>
    %233 = arith.mulf %232, %231 : vector<16x16xf32>
    %234 = arith.addf %228, %233 : vector<16x16xf32>
    %c35 = arith.constant 35 : index
    %c0_167 = arith.constant 0 : index
    %235 = vector.load %arg2[%c35, %c0_167] : memref<98x16xf32, #tpu.memory_space<vmem>>, vector<1x16xf32>
    %c0_168 = arith.constant 0 : index
    %c5_169 = arith.constant 5 : index
    %c0_170 = arith.constant 0 : index
    %236 = vector.load %arg4[%c0_168, %c5_169, %c0_170] : memref<2x22x22xf32, #tpu.memory_space<vmem>>, vector<1x16x16xf32>
    %237 = vector.shape_cast %236 : vector<1x16x16xf32> to vector<16x16xf32>
    %238 = vector.broadcast %235 : vector<1x16xf32> to vector<16x16xf32>
    %239 = arith.mulf %238, %237 : vector<16x16xf32>
    %240 = arith.addf %234, %239 : vector<16x16xf32>
    %c36 = arith.constant 36 : index
    %c0_171 = arith.constant 0 : index
    %241 = vector.load %arg2[%c36, %c0_171] : memref<98x16xf32, #tpu.memory_space<vmem>>, vector<1x16xf32>
    %c0_172 = arith.constant 0 : index
    %c5_173 = arith.constant 5 : index
    %c1_174 = arith.constant 1 : index
    %242 = vector.load %arg4[%c0_172, %c5_173, %c1_174] : memref<2x22x22xf32, #tpu.memory_space<vmem>>, vector<1x16x16xf32>
    %243 = vector.shape_cast %242 : vector<1x16x16xf32> to vector<16x16xf32>
    %244 = vector.broadcast %241 : vector<1x16xf32> to vector<16x16xf32>
    %245 = arith.mulf %244, %243 : vector<16x16xf32>
    %246 = arith.addf %240, %245 : vector<16x16xf32>
    %c37 = arith.constant 37 : index
    %c0_175 = arith.constant 0 : index
    %247 = vector.load %arg2[%c37, %c0_175] : memref<98x16xf32, #tpu.memory_space<vmem>>, vector<1x16xf32>
    %c0_176 = arith.constant 0 : index
    %c5_177 = arith.constant 5 : index
    %c2_178 = arith.constant 2 : index
    %248 = vector.load %arg4[%c0_176, %c5_177, %c2_178] : memref<2x22x22xf32, #tpu.memory_space<vmem>>, vector<1x16x16xf32>
    %249 = vector.shape_cast %248 : vector<1x16x16xf32> to vector<16x16xf32>
    %250 = vector.broadcast %247 : vector<1x16xf32> to vector<16x16xf32>
    %251 = arith.mulf %250, %249 : vector<16x16xf32>
    %252 = arith.addf %246, %251 : vector<16x16xf32>
    %c38 = arith.constant 38 : index
    %c0_179 = arith.constant 0 : index
    %253 = vector.load %arg2[%c38, %c0_179] : memref<98x16xf32, #tpu.memory_space<vmem>>, vector<1x16xf32>
    %c0_180 = arith.constant 0 : index
    %c5_181 = arith.constant 5 : index
    %c3_182 = arith.constant 3 : index
    %254 = vector.load %arg4[%c0_180, %c5_181, %c3_182] : memref<2x22x22xf32, #tpu.memory_space<vmem>>, vector<1x16x16xf32>
    %255 = vector.shape_cast %254 : vector<1x16x16xf32> to vector<16x16xf32>
    %256 = vector.broadcast %253 : vector<1x16xf32> to vector<16x16xf32>
    %257 = arith.mulf %256, %255 : vector<16x16xf32>
    %258 = arith.addf %252, %257 : vector<16x16xf32>
    %c39 = arith.constant 39 : index
    %c0_183 = arith.constant 0 : index
    %259 = vector.load %arg2[%c39, %c0_183] : memref<98x16xf32, #tpu.memory_space<vmem>>, vector<1x16xf32>
    %c0_184 = arith.constant 0 : index
    %c5_185 = arith.constant 5 : index
    %c4_186 = arith.constant 4 : index
    %260 = vector.load %arg4[%c0_184, %c5_185, %c4_186] : memref<2x22x22xf32, #tpu.memory_space<vmem>>, vector<1x16x16xf32>
    %261 = vector.shape_cast %260 : vector<1x16x16xf32> to vector<16x16xf32>
    %262 = vector.broadcast %259 : vector<1x16xf32> to vector<16x16xf32>
    %263 = arith.mulf %262, %261 : vector<16x16xf32>
    %264 = arith.addf %258, %263 : vector<16x16xf32>
    %c40 = arith.constant 40 : index
    %c0_187 = arith.constant 0 : index
    %265 = vector.load %arg2[%c40, %c0_187] : memref<98x16xf32, #tpu.memory_space<vmem>>, vector<1x16xf32>
    %c0_188 = arith.constant 0 : index
    %c5_189 = arith.constant 5 : index
    %c5_190 = arith.constant 5 : index
    %266 = vector.load %arg4[%c0_188, %c5_189, %c5_190] : memref<2x22x22xf32, #tpu.memory_space<vmem>>, vector<1x16x16xf32>
    %267 = vector.shape_cast %266 : vector<1x16x16xf32> to vector<16x16xf32>
    %268 = vector.broadcast %265 : vector<1x16xf32> to vector<16x16xf32>
    %269 = arith.mulf %268, %267 : vector<16x16xf32>
    %270 = arith.addf %264, %269 : vector<16x16xf32>
    %c41 = arith.constant 41 : index
    %c0_191 = arith.constant 0 : index
    %271 = vector.load %arg2[%c41, %c0_191] : memref<98x16xf32, #tpu.memory_space<vmem>>, vector<1x16xf32>
    %c0_192 = arith.constant 0 : index
    %c5_193 = arith.constant 5 : index
    %c6_194 = arith.constant 6 : index
    %272 = vector.load %arg4[%c0_192, %c5_193, %c6_194] : memref<2x22x22xf32, #tpu.memory_space<vmem>>, vector<1x16x16xf32>
    %273 = vector.shape_cast %272 : vector<1x16x16xf32> to vector<16x16xf32>
    %274 = vector.broadcast %271 : vector<1x16xf32> to vector<16x16xf32>
    %275 = arith.mulf %274, %273 : vector<16x16xf32>
    %276 = arith.addf %270, %275 : vector<16x16xf32>
    %c42 = arith.constant 42 : index
    %c0_195 = arith.constant 0 : index
    %277 = vector.load %arg2[%c42, %c0_195] : memref<98x16xf32, #tpu.memory_space<vmem>>, vector<1x16xf32>
    %c0_196 = arith.constant 0 : index
    %c6_197 = arith.constant 6 : index
    %c0_198 = arith.constant 0 : index
    %278 = vector.load %arg4[%c0_196, %c6_197, %c0_198] : memref<2x22x22xf32, #tpu.memory_space<vmem>>, vector<1x16x16xf32>
    %279 = vector.shape_cast %278 : vector<1x16x16xf32> to vector<16x16xf32>
    %280 = vector.broadcast %277 : vector<1x16xf32> to vector<16x16xf32>
    %281 = arith.mulf %280, %279 : vector<16x16xf32>
    %282 = arith.addf %276, %281 : vector<16x16xf32>
    %c43 = arith.constant 43 : index
    %c0_199 = arith.constant 0 : index
    %283 = vector.load %arg2[%c43, %c0_199] : memref<98x16xf32, #tpu.memory_space<vmem>>, vector<1x16xf32>
    %c0_200 = arith.constant 0 : index
    %c6_201 = arith.constant 6 : index
    %c1_202 = arith.constant 1 : index
    %284 = vector.load %arg4[%c0_200, %c6_201, %c1_202] : memref<2x22x22xf32, #tpu.memory_space<vmem>>, vector<1x16x16xf32>
    %285 = vector.shape_cast %284 : vector<1x16x16xf32> to vector<16x16xf32>
    %286 = vector.broadcast %283 : vector<1x16xf32> to vector<16x16xf32>
    %287 = arith.mulf %286, %285 : vector<16x16xf32>
    %288 = arith.addf %282, %287 : vector<16x16xf32>
    %c44 = arith.constant 44 : index
    %c0_203 = arith.constant 0 : index
    %289 = vector.load %arg2[%c44, %c0_203] : memref<98x16xf32, #tpu.memory_space<vmem>>, vector<1x16xf32>
    %c0_204 = arith.constant 0 : index
    %c6_205 = arith.constant 6 : index
    %c2_206 = arith.constant 2 : index
    %290 = vector.load %arg4[%c0_204, %c6_205, %c2_206] : memref<2x22x22xf32, #tpu.memory_space<vmem>>, vector<1x16x16xf32>
    %291 = vector.shape_cast %290 : vector<1x16x16xf32> to vector<16x16xf32>
    %292 = vector.broadcast %289 : vector<1x16xf32> to vector<16x16xf32>
    %293 = arith.mulf %292, %291 : vector<16x16xf32>
    %294 = arith.addf %288, %293 : vector<16x16xf32>
    %c45 = arith.constant 45 : index
    %c0_207 = arith.constant 0 : index
    %295 = vector.load %arg2[%c45, %c0_207] : memref<98x16xf32, #tpu.memory_space<vmem>>, vector<1x16xf32>
    %c0_208 = arith.constant 0 : index
    %c6_209 = arith.constant 6 : index
    %c3_210 = arith.constant 3 : index
    %296 = vector.load %arg4[%c0_208, %c6_209, %c3_210] : memref<2x22x22xf32, #tpu.memory_space<vmem>>, vector<1x16x16xf32>
    %297 = vector.shape_cast %296 : vector<1x16x16xf32> to vector<16x16xf32>
    %298 = vector.broadcast %295 : vector<1x16xf32> to vector<16x16xf32>
    %299 = arith.mulf %298, %297 : vector<16x16xf32>
    %300 = arith.addf %294, %299 : vector<16x16xf32>
    %c46 = arith.constant 46 : index
    %c0_211 = arith.constant 0 : index
    %301 = vector.load %arg2[%c46, %c0_211] : memref<98x16xf32, #tpu.memory_space<vmem>>, vector<1x16xf32>
    %c0_212 = arith.constant 0 : index
    %c6_213 = arith.constant 6 : index
    %c4_214 = arith.constant 4 : index
    %302 = vector.load %arg4[%c0_212, %c6_213, %c4_214] : memref<2x22x22xf32, #tpu.memory_space<vmem>>, vector<1x16x16xf32>
    %303 = vector.shape_cast %302 : vector<1x16x16xf32> to vector<16x16xf32>
    %304 = vector.broadcast %301 : vector<1x16xf32> to vector<16x16xf32>
    %305 = arith.mulf %304, %303 : vector<16x16xf32>
    %306 = arith.addf %300, %305 : vector<16x16xf32>
    %c47 = arith.constant 47 : index
    %c0_215 = arith.constant 0 : index
    %307 = vector.load %arg2[%c47, %c0_215] : memref<98x16xf32, #tpu.memory_space<vmem>>, vector<1x16xf32>
    %c0_216 = arith.constant 0 : index
    %c6_217 = arith.constant 6 : index
    %c5_218 = arith.constant 5 : index
    %308 = vector.load %arg4[%c0_216, %c6_217, %c5_218] : memref<2x22x22xf32, #tpu.memory_space<vmem>>, vector<1x16x16xf32>
    %309 = vector.shape_cast %308 : vector<1x16x16xf32> to vector<16x16xf32>
    %310 = vector.broadcast %307 : vector<1x16xf32> to vector<16x16xf32>
    %311 = arith.mulf %310, %309 : vector<16x16xf32>
    %312 = arith.addf %306, %311 : vector<16x16xf32>
    %c48 = arith.constant 48 : index
    %c0_219 = arith.constant 0 : index
    %313 = vector.load %arg2[%c48, %c0_219] : memref<98x16xf32, #tpu.memory_space<vmem>>, vector<1x16xf32>
    %c0_220 = arith.constant 0 : index
    %c6_221 = arith.constant 6 : index
    %c6_222 = arith.constant 6 : index
    %314 = vector.load %arg4[%c0_220, %c6_221, %c6_222] : memref<2x22x22xf32, #tpu.memory_space<vmem>>, vector<1x16x16xf32>
    %315 = vector.shape_cast %314 : vector<1x16x16xf32> to vector<16x16xf32>
    %316 = vector.broadcast %313 : vector<1x16xf32> to vector<16x16xf32>
    %317 = arith.mulf %316, %315 : vector<16x16xf32>
    %318 = arith.addf %312, %317 : vector<16x16xf32>
    %c49 = arith.constant 49 : index
    %c0_223 = arith.constant 0 : index
    %319 = vector.load %arg2[%c49, %c0_223] : memref<98x16xf32, #tpu.memory_space<vmem>>, vector<1x16xf32>
    %c1_224 = arith.constant 1 : index
    %c0_225 = arith.constant 0 : index
    %c0_226 = arith.constant 0 : index
    %320 = vector.load %arg4[%c1_224, %c0_225, %c0_226] : memref<2x22x22xf32, #tpu.memory_space<vmem>>, vector<1x16x16xf32>
    %321 = vector.shape_cast %320 : vector<1x16x16xf32> to vector<16x16xf32>
    %322 = vector.broadcast %319 : vector<1x16xf32> to vector<16x16xf32>
    %323 = arith.mulf %322, %321 : vector<16x16xf32>
    %324 = arith.addf %318, %323 : vector<16x16xf32>
    %c50 = arith.constant 50 : index
    %c0_227 = arith.constant 0 : index
    %325 = vector.load %arg2[%c50, %c0_227] : memref<98x16xf32, #tpu.memory_space<vmem>>, vector<1x16xf32>
    %c1_228 = arith.constant 1 : index
    %c0_229 = arith.constant 0 : index
    %c1_230 = arith.constant 1 : index
    %326 = vector.load %arg4[%c1_228, %c0_229, %c1_230] : memref<2x22x22xf32, #tpu.memory_space<vmem>>, vector<1x16x16xf32>
    %327 = vector.shape_cast %326 : vector<1x16x16xf32> to vector<16x16xf32>
    %328 = vector.broadcast %325 : vector<1x16xf32> to vector<16x16xf32>
    %329 = arith.mulf %328, %327 : vector<16x16xf32>
    %330 = arith.addf %324, %329 : vector<16x16xf32>
    %c51 = arith.constant 51 : index
    %c0_231 = arith.constant 0 : index
    %331 = vector.load %arg2[%c51, %c0_231] : memref<98x16xf32, #tpu.memory_space<vmem>>, vector<1x16xf32>
    %c1_232 = arith.constant 1 : index
    %c0_233 = arith.constant 0 : index
    %c2_234 = arith.constant 2 : index
    %332 = vector.load %arg4[%c1_232, %c0_233, %c2_234] : memref<2x22x22xf32, #tpu.memory_space<vmem>>, vector<1x16x16xf32>
    %333 = vector.shape_cast %332 : vector<1x16x16xf32> to vector<16x16xf32>
    %334 = vector.broadcast %331 : vector<1x16xf32> to vector<16x16xf32>
    %335 = arith.mulf %334, %333 : vector<16x16xf32>
    %336 = arith.addf %330, %335 : vector<16x16xf32>
    %c52 = arith.constant 52 : index
    %c0_235 = arith.constant 0 : index
    %337 = vector.load %arg2[%c52, %c0_235] : memref<98x16xf32, #tpu.memory_space<vmem>>, vector<1x16xf32>
    %c1_236 = arith.constant 1 : index
    %c0_237 = arith.constant 0 : index
    %c3_238 = arith.constant 3 : index
    %338 = vector.load %arg4[%c1_236, %c0_237, %c3_238] : memref<2x22x22xf32, #tpu.memory_space<vmem>>, vector<1x16x16xf32>
    %339 = vector.shape_cast %338 : vector<1x16x16xf32> to vector<16x16xf32>
    %340 = vector.broadcast %337 : vector<1x16xf32> to vector<16x16xf32>
    %341 = arith.mulf %340, %339 : vector<16x16xf32>
    %342 = arith.addf %336, %341 : vector<16x16xf32>
    %c53 = arith.constant 53 : index
    %c0_239 = arith.constant 0 : index
    %343 = vector.load %arg2[%c53, %c0_239] : memref<98x16xf32, #tpu.memory_space<vmem>>, vector<1x16xf32>
    %c1_240 = arith.constant 1 : index
    %c0_241 = arith.constant 0 : index
    %c4_242 = arith.constant 4 : index
    %344 = vector.load %arg4[%c1_240, %c0_241, %c4_242] : memref<2x22x22xf32, #tpu.memory_space<vmem>>, vector<1x16x16xf32>
    %345 = vector.shape_cast %344 : vector<1x16x16xf32> to vector<16x16xf32>
    %346 = vector.broadcast %343 : vector<1x16xf32> to vector<16x16xf32>
    %347 = arith.mulf %346, %345 : vector<16x16xf32>
    %348 = arith.addf %342, %347 : vector<16x16xf32>
    %c54 = arith.constant 54 : index
    %c0_243 = arith.constant 0 : index
    %349 = vector.load %arg2[%c54, %c0_243] : memref<98x16xf32, #tpu.memory_space<vmem>>, vector<1x16xf32>
    %c1_244 = arith.constant 1 : index
    %c0_245 = arith.constant 0 : index
    %c5_246 = arith.constant 5 : index
    %350 = vector.load %arg4[%c1_244, %c0_245, %c5_246] : memref<2x22x22xf32, #tpu.memory_space<vmem>>, vector<1x16x16xf32>
    %351 = vector.shape_cast %350 : vector<1x16x16xf32> to vector<16x16xf32>
    %352 = vector.broadcast %349 : vector<1x16xf32> to vector<16x16xf32>
    %353 = arith.mulf %352, %351 : vector<16x16xf32>
    %354 = arith.addf %348, %353 : vector<16x16xf32>
    %c55 = arith.constant 55 : index
    %c0_247 = arith.constant 0 : index
    %355 = vector.load %arg2[%c55, %c0_247] : memref<98x16xf32, #tpu.memory_space<vmem>>, vector<1x16xf32>
    %c1_248 = arith.constant 1 : index
    %c0_249 = arith.constant 0 : index
    %c6_250 = arith.constant 6 : index
    %356 = vector.load %arg4[%c1_248, %c0_249, %c6_250] : memref<2x22x22xf32, #tpu.memory_space<vmem>>, vector<1x16x16xf32>
    %357 = vector.shape_cast %356 : vector<1x16x16xf32> to vector<16x16xf32>
    %358 = vector.broadcast %355 : vector<1x16xf32> to vector<16x16xf32>
    %359 = arith.mulf %358, %357 : vector<16x16xf32>
    %360 = arith.addf %354, %359 : vector<16x16xf32>
    %c56 = arith.constant 56 : index
    %c0_251 = arith.constant 0 : index
    %361 = vector.load %arg2[%c56, %c0_251] : memref<98x16xf32, #tpu.memory_space<vmem>>, vector<1x16xf32>
    %c1_252 = arith.constant 1 : index
    %c1_253 = arith.constant 1 : index
    %c0_254 = arith.constant 0 : index
    %362 = vector.load %arg4[%c1_252, %c1_253, %c0_254] : memref<2x22x22xf32, #tpu.memory_space<vmem>>, vector<1x16x16xf32>
    %363 = vector.shape_cast %362 : vector<1x16x16xf32> to vector<16x16xf32>
    %364 = vector.broadcast %361 : vector<1x16xf32> to vector<16x16xf32>
    %365 = arith.mulf %364, %363 : vector<16x16xf32>
    %366 = arith.addf %360, %365 : vector<16x16xf32>
    %c57 = arith.constant 57 : index
    %c0_255 = arith.constant 0 : index
    %367 = vector.load %arg2[%c57, %c0_255] : memref<98x16xf32, #tpu.memory_space<vmem>>, vector<1x16xf32>
    %c1_256 = arith.constant 1 : index
    %c1_257 = arith.constant 1 : index
    %c1_258 = arith.constant 1 : index
    %368 = vector.load %arg4[%c1_256, %c1_257, %c1_258] : memref<2x22x22xf32, #tpu.memory_space<vmem>>, vector<1x16x16xf32>
    %369 = vector.shape_cast %368 : vector<1x16x16xf32> to vector<16x16xf32>
    %370 = vector.broadcast %367 : vector<1x16xf32> to vector<16x16xf32>
    %371 = arith.mulf %370, %369 : vector<16x16xf32>
    %372 = arith.addf %366, %371 : vector<16x16xf32>
    %c58 = arith.constant 58 : index
    %c0_259 = arith.constant 0 : index
    %373 = vector.load %arg2[%c58, %c0_259] : memref<98x16xf32, #tpu.memory_space<vmem>>, vector<1x16xf32>
    %c1_260 = arith.constant 1 : index
    %c1_261 = arith.constant 1 : index
    %c2_262 = arith.constant 2 : index
    %374 = vector.load %arg4[%c1_260, %c1_261, %c2_262] : memref<2x22x22xf32, #tpu.memory_space<vmem>>, vector<1x16x16xf32>
    %375 = vector.shape_cast %374 : vector<1x16x16xf32> to vector<16x16xf32>
    %376 = vector.broadcast %373 : vector<1x16xf32> to vector<16x16xf32>
    %377 = arith.mulf %376, %375 : vector<16x16xf32>
    %378 = arith.addf %372, %377 : vector<16x16xf32>
    %c59 = arith.constant 59 : index
    %c0_263 = arith.constant 0 : index
    %379 = vector.load %arg2[%c59, %c0_263] : memref<98x16xf32, #tpu.memory_space<vmem>>, vector<1x16xf32>
    %c1_264 = arith.constant 1 : index
    %c1_265 = arith.constant 1 : index
    %c3_266 = arith.constant 3 : index
    %380 = vector.load %arg4[%c1_264, %c1_265, %c3_266] : memref<2x22x22xf32, #tpu.memory_space<vmem>>, vector<1x16x16xf32>
    %381 = vector.shape_cast %380 : vector<1x16x16xf32> to vector<16x16xf32>
    %382 = vector.broadcast %379 : vector<1x16xf32> to vector<16x16xf32>
    %383 = arith.mulf %382, %381 : vector<16x16xf32>
    %384 = arith.addf %378, %383 : vector<16x16xf32>
    %c60 = arith.constant 60 : index
    %c0_267 = arith.constant 0 : index
    %385 = vector.load %arg2[%c60, %c0_267] : memref<98x16xf32, #tpu.memory_space<vmem>>, vector<1x16xf32>
    %c1_268 = arith.constant 1 : index
    %c1_269 = arith.constant 1 : index
    %c4_270 = arith.constant 4 : index
    %386 = vector.load %arg4[%c1_268, %c1_269, %c4_270] : memref<2x22x22xf32, #tpu.memory_space<vmem>>, vector<1x16x16xf32>
    %387 = vector.shape_cast %386 : vector<1x16x16xf32> to vector<16x16xf32>
    %388 = vector.broadcast %385 : vector<1x16xf32> to vector<16x16xf32>
    %389 = arith.mulf %388, %387 : vector<16x16xf32>
    %390 = arith.addf %384, %389 : vector<16x16xf32>
    %c61 = arith.constant 61 : index
    %c0_271 = arith.constant 0 : index
    %391 = vector.load %arg2[%c61, %c0_271] : memref<98x16xf32, #tpu.memory_space<vmem>>, vector<1x16xf32>
    %c1_272 = arith.constant 1 : index
    %c1_273 = arith.constant 1 : index
    %c5_274 = arith.constant 5 : index
    %392 = vector.load %arg4[%c1_272, %c1_273, %c5_274] : memref<2x22x22xf32, #tpu.memory_space<vmem>>, vector<1x16x16xf32>
    %393 = vector.shape_cast %392 : vector<1x16x16xf32> to vector<16x16xf32>
    %394 = vector.broadcast %391 : vector<1x16xf32> to vector<16x16xf32>
    %395 = arith.mulf %394, %393 : vector<16x16xf32>
    %396 = arith.addf %390, %395 : vector<16x16xf32>
    %c62 = arith.constant 62 : index
    %c0_275 = arith.constant 0 : index
    %397 = vector.load %arg2[%c62, %c0_275] : memref<98x16xf32, #tpu.memory_space<vmem>>, vector<1x16xf32>
    %c1_276 = arith.constant 1 : index
    %c1_277 = arith.constant 1 : index
    %c6_278 = arith.constant 6 : index
    %398 = vector.load %arg4[%c1_276, %c1_277, %c6_278] : memref<2x22x22xf32, #tpu.memory_space<vmem>>, vector<1x16x16xf32>
    %399 = vector.shape_cast %398 : vector<1x16x16xf32> to vector<16x16xf32>
    %400 = vector.broadcast %397 : vector<1x16xf32> to vector<16x16xf32>
    %401 = arith.mulf %400, %399 : vector<16x16xf32>
    %402 = arith.addf %396, %401 : vector<16x16xf32>
    %c63 = arith.constant 63 : index
    %c0_279 = arith.constant 0 : index
    %403 = vector.load %arg2[%c63, %c0_279] : memref<98x16xf32, #tpu.memory_space<vmem>>, vector<1x16xf32>
    %c1_280 = arith.constant 1 : index
    %c2_281 = arith.constant 2 : index
    %c0_282 = arith.constant 0 : index
    %404 = vector.load %arg4[%c1_280, %c2_281, %c0_282] : memref<2x22x22xf32, #tpu.memory_space<vmem>>, vector<1x16x16xf32>
    %405 = vector.shape_cast %404 : vector<1x16x16xf32> to vector<16x16xf32>
    %406 = vector.broadcast %403 : vector<1x16xf32> to vector<16x16xf32>
    %407 = arith.mulf %406, %405 : vector<16x16xf32>
    %408 = arith.addf %402, %407 : vector<16x16xf32>
    %c64 = arith.constant 64 : index
    %c0_283 = arith.constant 0 : index
    %409 = vector.load %arg2[%c64, %c0_283] : memref<98x16xf32, #tpu.memory_space<vmem>>, vector<1x16xf32>
    %c1_284 = arith.constant 1 : index
    %c2_285 = arith.constant 2 : index
    %c1_286 = arith.constant 1 : index
    %410 = vector.load %arg4[%c1_284, %c2_285, %c1_286] : memref<2x22x22xf32, #tpu.memory_space<vmem>>, vector<1x16x16xf32>
    %411 = vector.shape_cast %410 : vector<1x16x16xf32> to vector<16x16xf32>
    %412 = vector.broadcast %409 : vector<1x16xf32> to vector<16x16xf32>
    %413 = arith.mulf %412, %411 : vector<16x16xf32>
    %414 = arith.addf %408, %413 : vector<16x16xf32>
    %c65 = arith.constant 65 : index
    %c0_287 = arith.constant 0 : index
    %415 = vector.load %arg2[%c65, %c0_287] : memref<98x16xf32, #tpu.memory_space<vmem>>, vector<1x16xf32>
    %c1_288 = arith.constant 1 : index
    %c2_289 = arith.constant 2 : index
    %c2_290 = arith.constant 2 : index
    %416 = vector.load %arg4[%c1_288, %c2_289, %c2_290] : memref<2x22x22xf32, #tpu.memory_space<vmem>>, vector<1x16x16xf32>
    %417 = vector.shape_cast %416 : vector<1x16x16xf32> to vector<16x16xf32>
    %418 = vector.broadcast %415 : vector<1x16xf32> to vector<16x16xf32>
    %419 = arith.mulf %418, %417 : vector<16x16xf32>
    %420 = arith.addf %414, %419 : vector<16x16xf32>
    %c66 = arith.constant 66 : index
    %c0_291 = arith.constant 0 : index
    %421 = vector.load %arg2[%c66, %c0_291] : memref<98x16xf32, #tpu.memory_space<vmem>>, vector<1x16xf32>
    %c1_292 = arith.constant 1 : index
    %c2_293 = arith.constant 2 : index
    %c3_294 = arith.constant 3 : index
    %422 = vector.load %arg4[%c1_292, %c2_293, %c3_294] : memref<2x22x22xf32, #tpu.memory_space<vmem>>, vector<1x16x16xf32>
    %423 = vector.shape_cast %422 : vector<1x16x16xf32> to vector<16x16xf32>
    %424 = vector.broadcast %421 : vector<1x16xf32> to vector<16x16xf32>
    %425 = arith.mulf %424, %423 : vector<16x16xf32>
    %426 = arith.addf %420, %425 : vector<16x16xf32>
    %c67 = arith.constant 67 : index
    %c0_295 = arith.constant 0 : index
    %427 = vector.load %arg2[%c67, %c0_295] : memref<98x16xf32, #tpu.memory_space<vmem>>, vector<1x16xf32>
    %c1_296 = arith.constant 1 : index
    %c2_297 = arith.constant 2 : index
    %c4_298 = arith.constant 4 : index
    %428 = vector.load %arg4[%c1_296, %c2_297, %c4_298] : memref<2x22x22xf32, #tpu.memory_space<vmem>>, vector<1x16x16xf32>
    %429 = vector.shape_cast %428 : vector<1x16x16xf32> to vector<16x16xf32>
    %430 = vector.broadcast %427 : vector<1x16xf32> to vector<16x16xf32>
    %431 = arith.mulf %430, %429 : vector<16x16xf32>
    %432 = arith.addf %426, %431 : vector<16x16xf32>
    %c68 = arith.constant 68 : index
    %c0_299 = arith.constant 0 : index
    %433 = vector.load %arg2[%c68, %c0_299] : memref<98x16xf32, #tpu.memory_space<vmem>>, vector<1x16xf32>
    %c1_300 = arith.constant 1 : index
    %c2_301 = arith.constant 2 : index
    %c5_302 = arith.constant 5 : index
    %434 = vector.load %arg4[%c1_300, %c2_301, %c5_302] : memref<2x22x22xf32, #tpu.memory_space<vmem>>, vector<1x16x16xf32>
    %435 = vector.shape_cast %434 : vector<1x16x16xf32> to vector<16x16xf32>
    %436 = vector.broadcast %433 : vector<1x16xf32> to vector<16x16xf32>
    %437 = arith.mulf %436, %435 : vector<16x16xf32>
    %438 = arith.addf %432, %437 : vector<16x16xf32>
    %c69 = arith.constant 69 : index
    %c0_303 = arith.constant 0 : index
    %439 = vector.load %arg2[%c69, %c0_303] : memref<98x16xf32, #tpu.memory_space<vmem>>, vector<1x16xf32>
    %c1_304 = arith.constant 1 : index
    %c2_305 = arith.constant 2 : index
    %c6_306 = arith.constant 6 : index
    %440 = vector.load %arg4[%c1_304, %c2_305, %c6_306] : memref<2x22x22xf32, #tpu.memory_space<vmem>>, vector<1x16x16xf32>
    %441 = vector.shape_cast %440 : vector<1x16x16xf32> to vector<16x16xf32>
    %442 = vector.broadcast %439 : vector<1x16xf32> to vector<16x16xf32>
    %443 = arith.mulf %442, %441 : vector<16x16xf32>
    %444 = arith.addf %438, %443 : vector<16x16xf32>
    %c70 = arith.constant 70 : index
    %c0_307 = arith.constant 0 : index
    %445 = vector.load %arg2[%c70, %c0_307] : memref<98x16xf32, #tpu.memory_space<vmem>>, vector<1x16xf32>
    %c1_308 = arith.constant 1 : index
    %c3_309 = arith.constant 3 : index
    %c0_310 = arith.constant 0 : index
    %446 = vector.load %arg4[%c1_308, %c3_309, %c0_310] : memref<2x22x22xf32, #tpu.memory_space<vmem>>, vector<1x16x16xf32>
    %447 = vector.shape_cast %446 : vector<1x16x16xf32> to vector<16x16xf32>
    %448 = vector.broadcast %445 : vector<1x16xf32> to vector<16x16xf32>
    %449 = arith.mulf %448, %447 : vector<16x16xf32>
    %450 = arith.addf %444, %449 : vector<16x16xf32>
    %c71 = arith.constant 71 : index
    %c0_311 = arith.constant 0 : index
    %451 = vector.load %arg2[%c71, %c0_311] : memref<98x16xf32, #tpu.memory_space<vmem>>, vector<1x16xf32>
    %c1_312 = arith.constant 1 : index
    %c3_313 = arith.constant 3 : index
    %c1_314 = arith.constant 1 : index
    %452 = vector.load %arg4[%c1_312, %c3_313, %c1_314] : memref<2x22x22xf32, #tpu.memory_space<vmem>>, vector<1x16x16xf32>
    %453 = vector.shape_cast %452 : vector<1x16x16xf32> to vector<16x16xf32>
    %454 = vector.broadcast %451 : vector<1x16xf32> to vector<16x16xf32>
    %455 = arith.mulf %454, %453 : vector<16x16xf32>
    %456 = arith.addf %450, %455 : vector<16x16xf32>
    %c72 = arith.constant 72 : index
    %c0_315 = arith.constant 0 : index
    %457 = vector.load %arg2[%c72, %c0_315] : memref<98x16xf32, #tpu.memory_space<vmem>>, vector<1x16xf32>
    %c1_316 = arith.constant 1 : index
    %c3_317 = arith.constant 3 : index
    %c2_318 = arith.constant 2 : index
    %458 = vector.load %arg4[%c1_316, %c3_317, %c2_318] : memref<2x22x22xf32, #tpu.memory_space<vmem>>, vector<1x16x16xf32>
    %459 = vector.shape_cast %458 : vector<1x16x16xf32> to vector<16x16xf32>
    %460 = vector.broadcast %457 : vector<1x16xf32> to vector<16x16xf32>
    %461 = arith.mulf %460, %459 : vector<16x16xf32>
    %462 = arith.addf %456, %461 : vector<16x16xf32>
    %c73 = arith.constant 73 : index
    %c0_319 = arith.constant 0 : index
    %463 = vector.load %arg2[%c73, %c0_319] : memref<98x16xf32, #tpu.memory_space<vmem>>, vector<1x16xf32>
    %c1_320 = arith.constant 1 : index
    %c3_321 = arith.constant 3 : index
    %c3_322 = arith.constant 3 : index
    %464 = vector.load %arg4[%c1_320, %c3_321, %c3_322] : memref<2x22x22xf32, #tpu.memory_space<vmem>>, vector<1x16x16xf32>
    %465 = vector.shape_cast %464 : vector<1x16x16xf32> to vector<16x16xf32>
    %466 = vector.broadcast %463 : vector<1x16xf32> to vector<16x16xf32>
    %467 = arith.mulf %466, %465 : vector<16x16xf32>
    %468 = arith.addf %462, %467 : vector<16x16xf32>
    %c74 = arith.constant 74 : index
    %c0_323 = arith.constant 0 : index
    %469 = vector.load %arg2[%c74, %c0_323] : memref<98x16xf32, #tpu.memory_space<vmem>>, vector<1x16xf32>
    %c1_324 = arith.constant 1 : index
    %c3_325 = arith.constant 3 : index
    %c4_326 = arith.constant 4 : index
    %470 = vector.load %arg4[%c1_324, %c3_325, %c4_326] : memref<2x22x22xf32, #tpu.memory_space<vmem>>, vector<1x16x16xf32>
    %471 = vector.shape_cast %470 : vector<1x16x16xf32> to vector<16x16xf32>
    %472 = vector.broadcast %469 : vector<1x16xf32> to vector<16x16xf32>
    %473 = arith.mulf %472, %471 : vector<16x16xf32>
    %474 = arith.addf %468, %473 : vector<16x16xf32>
    %c75 = arith.constant 75 : index
    %c0_327 = arith.constant 0 : index
    %475 = vector.load %arg2[%c75, %c0_327] : memref<98x16xf32, #tpu.memory_space<vmem>>, vector<1x16xf32>
    %c1_328 = arith.constant 1 : index
    %c3_329 = arith.constant 3 : index
    %c5_330 = arith.constant 5 : index
    %476 = vector.load %arg4[%c1_328, %c3_329, %c5_330] : memref<2x22x22xf32, #tpu.memory_space<vmem>>, vector<1x16x16xf32>
    %477 = vector.shape_cast %476 : vector<1x16x16xf32> to vector<16x16xf32>
    %478 = vector.broadcast %475 : vector<1x16xf32> to vector<16x16xf32>
    %479 = arith.mulf %478, %477 : vector<16x16xf32>
    %480 = arith.addf %474, %479 : vector<16x16xf32>
    %c76 = arith.constant 76 : index
    %c0_331 = arith.constant 0 : index
    %481 = vector.load %arg2[%c76, %c0_331] : memref<98x16xf32, #tpu.memory_space<vmem>>, vector<1x16xf32>
    %c1_332 = arith.constant 1 : index
    %c3_333 = arith.constant 3 : index
    %c6_334 = arith.constant 6 : index
    %482 = vector.load %arg4[%c1_332, %c3_333, %c6_334] : memref<2x22x22xf32, #tpu.memory_space<vmem>>, vector<1x16x16xf32>
    %483 = vector.shape_cast %482 : vector<1x16x16xf32> to vector<16x16xf32>
    %484 = vector.broadcast %481 : vector<1x16xf32> to vector<16x16xf32>
    %485 = arith.mulf %484, %483 : vector<16x16xf32>
    %486 = arith.addf %480, %485 : vector<16x16xf32>
    %c77 = arith.constant 77 : index
    %c0_335 = arith.constant 0 : index
    %487 = vector.load %arg2[%c77, %c0_335] : memref<98x16xf32, #tpu.memory_space<vmem>>, vector<1x16xf32>
    %c1_336 = arith.constant 1 : index
    %c4_337 = arith.constant 4 : index
    %c0_338 = arith.constant 0 : index
    %488 = vector.load %arg4[%c1_336, %c4_337, %c0_338] : memref<2x22x22xf32, #tpu.memory_space<vmem>>, vector<1x16x16xf32>
    %489 = vector.shape_cast %488 : vector<1x16x16xf32> to vector<16x16xf32>
    %490 = vector.broadcast %487 : vector<1x16xf32> to vector<16x16xf32>
    %491 = arith.mulf %490, %489 : vector<16x16xf32>
    %492 = arith.addf %486, %491 : vector<16x16xf32>
    %c78 = arith.constant 78 : index
    %c0_339 = arith.constant 0 : index
    %493 = vector.load %arg2[%c78, %c0_339] : memref<98x16xf32, #tpu.memory_space<vmem>>, vector<1x16xf32>
    %c1_340 = arith.constant 1 : index
    %c4_341 = arith.constant 4 : index
    %c1_342 = arith.constant 1 : index
    %494 = vector.load %arg4[%c1_340, %c4_341, %c1_342] : memref<2x22x22xf32, #tpu.memory_space<vmem>>, vector<1x16x16xf32>
    %495 = vector.shape_cast %494 : vector<1x16x16xf32> to vector<16x16xf32>
    %496 = vector.broadcast %493 : vector<1x16xf32> to vector<16x16xf32>
    %497 = arith.mulf %496, %495 : vector<16x16xf32>
    %498 = arith.addf %492, %497 : vector<16x16xf32>
    %c79 = arith.constant 79 : index
    %c0_343 = arith.constant 0 : index
    %499 = vector.load %arg2[%c79, %c0_343] : memref<98x16xf32, #tpu.memory_space<vmem>>, vector<1x16xf32>
    %c1_344 = arith.constant 1 : index
    %c4_345 = arith.constant 4 : index
    %c2_346 = arith.constant 2 : index
    %500 = vector.load %arg4[%c1_344, %c4_345, %c2_346] : memref<2x22x22xf32, #tpu.memory_space<vmem>>, vector<1x16x16xf32>
    %501 = vector.shape_cast %500 : vector<1x16x16xf32> to vector<16x16xf32>
    %502 = vector.broadcast %499 : vector<1x16xf32> to vector<16x16xf32>
    %503 = arith.mulf %502, %501 : vector<16x16xf32>
    %504 = arith.addf %498, %503 : vector<16x16xf32>
    %c80 = arith.constant 80 : index
    %c0_347 = arith.constant 0 : index
    %505 = vector.load %arg2[%c80, %c0_347] : memref<98x16xf32, #tpu.memory_space<vmem>>, vector<1x16xf32>
    %c1_348 = arith.constant 1 : index
    %c4_349 = arith.constant 4 : index
    %c3_350 = arith.constant 3 : index
    %506 = vector.load %arg4[%c1_348, %c4_349, %c3_350] : memref<2x22x22xf32, #tpu.memory_space<vmem>>, vector<1x16x16xf32>
    %507 = vector.shape_cast %506 : vector<1x16x16xf32> to vector<16x16xf32>
    %508 = vector.broadcast %505 : vector<1x16xf32> to vector<16x16xf32>
    %509 = arith.mulf %508, %507 : vector<16x16xf32>
    %510 = arith.addf %504, %509 : vector<16x16xf32>
    %c81 = arith.constant 81 : index
    %c0_351 = arith.constant 0 : index
    %511 = vector.load %arg2[%c81, %c0_351] : memref<98x16xf32, #tpu.memory_space<vmem>>, vector<1x16xf32>
    %c1_352 = arith.constant 1 : index
    %c4_353 = arith.constant 4 : index
    %c4_354 = arith.constant 4 : index
    %512 = vector.load %arg4[%c1_352, %c4_353, %c4_354] : memref<2x22x22xf32, #tpu.memory_space<vmem>>, vector<1x16x16xf32>
    %513 = vector.shape_cast %512 : vector<1x16x16xf32> to vector<16x16xf32>
    %514 = vector.broadcast %511 : vector<1x16xf32> to vector<16x16xf32>
    %515 = arith.mulf %514, %513 : vector<16x16xf32>
    %516 = arith.addf %510, %515 : vector<16x16xf32>
    %c82 = arith.constant 82 : index
    %c0_355 = arith.constant 0 : index
    %517 = vector.load %arg2[%c82, %c0_355] : memref<98x16xf32, #tpu.memory_space<vmem>>, vector<1x16xf32>
    %c1_356 = arith.constant 1 : index
    %c4_357 = arith.constant 4 : index
    %c5_358 = arith.constant 5 : index
    %518 = vector.load %arg4[%c1_356, %c4_357, %c5_358] : memref<2x22x22xf32, #tpu.memory_space<vmem>>, vector<1x16x16xf32>
    %519 = vector.shape_cast %518 : vector<1x16x16xf32> to vector<16x16xf32>
    %520 = vector.broadcast %517 : vector<1x16xf32> to vector<16x16xf32>
    %521 = arith.mulf %520, %519 : vector<16x16xf32>
    %522 = arith.addf %516, %521 : vector<16x16xf32>
    %c83 = arith.constant 83 : index
    %c0_359 = arith.constant 0 : index
    %523 = vector.load %arg2[%c83, %c0_359] : memref<98x16xf32, #tpu.memory_space<vmem>>, vector<1x16xf32>
    %c1_360 = arith.constant 1 : index
    %c4_361 = arith.constant 4 : index
    %c6_362 = arith.constant 6 : index
    %524 = vector.load %arg4[%c1_360, %c4_361, %c6_362] : memref<2x22x22xf32, #tpu.memory_space<vmem>>, vector<1x16x16xf32>
    %525 = vector.shape_cast %524 : vector<1x16x16xf32> to vector<16x16xf32>
    %526 = vector.broadcast %523 : vector<1x16xf32> to vector<16x16xf32>
    %527 = arith.mulf %526, %525 : vector<16x16xf32>
    %528 = arith.addf %522, %527 : vector<16x16xf32>
    %c84 = arith.constant 84 : index
    %c0_363 = arith.constant 0 : index
    %529 = vector.load %arg2[%c84, %c0_363] : memref<98x16xf32, #tpu.memory_space<vmem>>, vector<1x16xf32>
    %c1_364 = arith.constant 1 : index
    %c5_365 = arith.constant 5 : index
    %c0_366 = arith.constant 0 : index
    %530 = vector.load %arg4[%c1_364, %c5_365, %c0_366] : memref<2x22x22xf32, #tpu.memory_space<vmem>>, vector<1x16x16xf32>
    %531 = vector.shape_cast %530 : vector<1x16x16xf32> to vector<16x16xf32>
    %532 = vector.broadcast %529 : vector<1x16xf32> to vector<16x16xf32>
    %533 = arith.mulf %532, %531 : vector<16x16xf32>
    %534 = arith.addf %528, %533 : vector<16x16xf32>
    %c85 = arith.constant 85 : index
    %c0_367 = arith.constant 0 : index
    %535 = vector.load %arg2[%c85, %c0_367] : memref<98x16xf32, #tpu.memory_space<vmem>>, vector<1x16xf32>
    %c1_368 = arith.constant 1 : index
    %c5_369 = arith.constant 5 : index
    %c1_370 = arith.constant 1 : index
    %536 = vector.load %arg4[%c1_368, %c5_369, %c1_370] : memref<2x22x22xf32, #tpu.memory_space<vmem>>, vector<1x16x16xf32>
    %537 = vector.shape_cast %536 : vector<1x16x16xf32> to vector<16x16xf32>
    %538 = vector.broadcast %535 : vector<1x16xf32> to vector<16x16xf32>
    %539 = arith.mulf %538, %537 : vector<16x16xf32>
    %540 = arith.addf %534, %539 : vector<16x16xf32>
    %c86 = arith.constant 86 : index
    %c0_371 = arith.constant 0 : index
    %541 = vector.load %arg2[%c86, %c0_371] : memref<98x16xf32, #tpu.memory_space<vmem>>, vector<1x16xf32>
    %c1_372 = arith.constant 1 : index
    %c5_373 = arith.constant 5 : index
    %c2_374 = arith.constant 2 : index
    %542 = vector.load %arg4[%c1_372, %c5_373, %c2_374] : memref<2x22x22xf32, #tpu.memory_space<vmem>>, vector<1x16x16xf32>
    %543 = vector.shape_cast %542 : vector<1x16x16xf32> to vector<16x16xf32>
    %544 = vector.broadcast %541 : vector<1x16xf32> to vector<16x16xf32>
    %545 = arith.mulf %544, %543 : vector<16x16xf32>
    %546 = arith.addf %540, %545 : vector<16x16xf32>
    %c87 = arith.constant 87 : index
    %c0_375 = arith.constant 0 : index
    %547 = vector.load %arg2[%c87, %c0_375] : memref<98x16xf32, #tpu.memory_space<vmem>>, vector<1x16xf32>
    %c1_376 = arith.constant 1 : index
    %c5_377 = arith.constant 5 : index
    %c3_378 = arith.constant 3 : index
    %548 = vector.load %arg4[%c1_376, %c5_377, %c3_378] : memref<2x22x22xf32, #tpu.memory_space<vmem>>, vector<1x16x16xf32>
    %549 = vector.shape_cast %548 : vector<1x16x16xf32> to vector<16x16xf32>
    %550 = vector.broadcast %547 : vector<1x16xf32> to vector<16x16xf32>
    %551 = arith.mulf %550, %549 : vector<16x16xf32>
    %552 = arith.addf %546, %551 : vector<16x16xf32>
    %c88 = arith.constant 88 : index
    %c0_379 = arith.constant 0 : index
    %553 = vector.load %arg2[%c88, %c0_379] : memref<98x16xf32, #tpu.memory_space<vmem>>, vector<1x16xf32>
    %c1_380 = arith.constant 1 : index
    %c5_381 = arith.constant 5 : index
    %c4_382 = arith.constant 4 : index
    %554 = vector.load %arg4[%c1_380, %c5_381, %c4_382] : memref<2x22x22xf32, #tpu.memory_space<vmem>>, vector<1x16x16xf32>
    %555 = vector.shape_cast %554 : vector<1x16x16xf32> to vector<16x16xf32>
    %556 = vector.broadcast %553 : vector<1x16xf32> to vector<16x16xf32>
    %557 = arith.mulf %556, %555 : vector<16x16xf32>
    %558 = arith.addf %552, %557 : vector<16x16xf32>
    %c89 = arith.constant 89 : index
    %c0_383 = arith.constant 0 : index
    %559 = vector.load %arg2[%c89, %c0_383] : memref<98x16xf32, #tpu.memory_space<vmem>>, vector<1x16xf32>
    %c1_384 = arith.constant 1 : index
    %c5_385 = arith.constant 5 : index
    %c5_386 = arith.constant 5 : index
    %560 = vector.load %arg4[%c1_384, %c5_385, %c5_386] : memref<2x22x22xf32, #tpu.memory_space<vmem>>, vector<1x16x16xf32>
    %561 = vector.shape_cast %560 : vector<1x16x16xf32> to vector<16x16xf32>
    %562 = vector.broadcast %559 : vector<1x16xf32> to vector<16x16xf32>
    %563 = arith.mulf %562, %561 : vector<16x16xf32>
    %564 = arith.addf %558, %563 : vector<16x16xf32>
    %c90 = arith.constant 90 : index
    %c0_387 = arith.constant 0 : index
    %565 = vector.load %arg2[%c90, %c0_387] : memref<98x16xf32, #tpu.memory_space<vmem>>, vector<1x16xf32>
    %c1_388 = arith.constant 1 : index
    %c5_389 = arith.constant 5 : index
    %c6_390 = arith.constant 6 : index
    %566 = vector.load %arg4[%c1_388, %c5_389, %c6_390] : memref<2x22x22xf32, #tpu.memory_space<vmem>>, vector<1x16x16xf32>
    %567 = vector.shape_cast %566 : vector<1x16x16xf32> to vector<16x16xf32>
    %568 = vector.broadcast %565 : vector<1x16xf32> to vector<16x16xf32>
    %569 = arith.mulf %568, %567 : vector<16x16xf32>
    %570 = arith.addf %564, %569 : vector<16x16xf32>
    %c91 = arith.constant 91 : index
    %c0_391 = arith.constant 0 : index
    %571 = vector.load %arg2[%c91, %c0_391] : memref<98x16xf32, #tpu.memory_space<vmem>>, vector<1x16xf32>
    %c1_392 = arith.constant 1 : index
    %c6_393 = arith.constant 6 : index
    %c0_394 = arith.constant 0 : index
    %572 = vector.load %arg4[%c1_392, %c6_393, %c0_394] : memref<2x22x22xf32, #tpu.memory_space<vmem>>, vector<1x16x16xf32>
    %573 = vector.shape_cast %572 : vector<1x16x16xf32> to vector<16x16xf32>
    %574 = vector.broadcast %571 : vector<1x16xf32> to vector<16x16xf32>
    %575 = arith.mulf %574, %573 : vector<16x16xf32>
    %576 = arith.addf %570, %575 : vector<16x16xf32>
    %c92 = arith.constant 92 : index
    %c0_395 = arith.constant 0 : index
    %577 = vector.load %arg2[%c92, %c0_395] : memref<98x16xf32, #tpu.memory_space<vmem>>, vector<1x16xf32>
    %c1_396 = arith.constant 1 : index
    %c6_397 = arith.constant 6 : index
    %c1_398 = arith.constant 1 : index
    %578 = vector.load %arg4[%c1_396, %c6_397, %c1_398] : memref<2x22x22xf32, #tpu.memory_space<vmem>>, vector<1x16x16xf32>
    %579 = vector.shape_cast %578 : vector<1x16x16xf32> to vector<16x16xf32>
    %580 = vector.broadcast %577 : vector<1x16xf32> to vector<16x16xf32>
    %581 = arith.mulf %580, %579 : vector<16x16xf32>
    %582 = arith.addf %576, %581 : vector<16x16xf32>
    %c93 = arith.constant 93 : index
    %c0_399 = arith.constant 0 : index
    %583 = vector.load %arg2[%c93, %c0_399] : memref<98x16xf32, #tpu.memory_space<vmem>>, vector<1x16xf32>
    %c1_400 = arith.constant 1 : index
    %c6_401 = arith.constant 6 : index
    %c2_402 = arith.constant 2 : index
    %584 = vector.load %arg4[%c1_400, %c6_401, %c2_402] : memref<2x22x22xf32, #tpu.memory_space<vmem>>, vector<1x16x16xf32>
    %585 = vector.shape_cast %584 : vector<1x16x16xf32> to vector<16x16xf32>
    %586 = vector.broadcast %583 : vector<1x16xf32> to vector<16x16xf32>
    %587 = arith.mulf %586, %585 : vector<16x16xf32>
    %588 = arith.addf %582, %587 : vector<16x16xf32>
    %c94 = arith.constant 94 : index
    %c0_403 = arith.constant 0 : index
    %589 = vector.load %arg2[%c94, %c0_403] : memref<98x16xf32, #tpu.memory_space<vmem>>, vector<1x16xf32>
    %c1_404 = arith.constant 1 : index
    %c6_405 = arith.constant 6 : index
    %c3_406 = arith.constant 3 : index
    %590 = vector.load %arg4[%c1_404, %c6_405, %c3_406] : memref<2x22x22xf32, #tpu.memory_space<vmem>>, vector<1x16x16xf32>
    %591 = vector.shape_cast %590 : vector<1x16x16xf32> to vector<16x16xf32>
    %592 = vector.broadcast %589 : vector<1x16xf32> to vector<16x16xf32>
    %593 = arith.mulf %592, %591 : vector<16x16xf32>
    %594 = arith.addf %588, %593 : vector<16x16xf32>
    %c95 = arith.constant 95 : index
    %c0_407 = arith.constant 0 : index
    %595 = vector.load %arg2[%c95, %c0_407] : memref<98x16xf32, #tpu.memory_space<vmem>>, vector<1x16xf32>
    %c1_408 = arith.constant 1 : index
    %c6_409 = arith.constant 6 : index
    %c4_410 = arith.constant 4 : index
    %596 = vector.load %arg4[%c1_408, %c6_409, %c4_410] : memref<2x22x22xf32, #tpu.memory_space<vmem>>, vector<1x16x16xf32>
    %597 = vector.shape_cast %596 : vector<1x16x16xf32> to vector<16x16xf32>
    %598 = vector.broadcast %595 : vector<1x16xf32> to vector<16x16xf32>
    %599 = arith.mulf %598, %597 : vector<16x16xf32>
    %600 = arith.addf %594, %599 : vector<16x16xf32>
    %c96 = arith.constant 96 : index
    %c0_411 = arith.constant 0 : index
    %601 = vector.load %arg2[%c96, %c0_411] : memref<98x16xf32, #tpu.memory_space<vmem>>, vector<1x16xf32>
    %c1_412 = arith.constant 1 : index
    %c6_413 = arith.constant 6 : index
    %c5_414 = arith.constant 5 : index
    %602 = vector.load %arg4[%c1_412, %c6_413, %c5_414] : memref<2x22x22xf32, #tpu.memory_space<vmem>>, vector<1x16x16xf32>
    %603 = vector.shape_cast %602 : vector<1x16x16xf32> to vector<16x16xf32>
    %604 = vector.broadcast %601 : vector<1x16xf32> to vector<16x16xf32>
    %605 = arith.mulf %604, %603 : vector<16x16xf32>
    %606 = arith.addf %600, %605 : vector<16x16xf32>
    %c97 = arith.constant 97 : index
    %c0_415 = arith.constant 0 : index
    %607 = vector.load %arg2[%c97, %c0_415] : memref<98x16xf32, #tpu.memory_space<vmem>>, vector<1x16xf32>
    %c1_416 = arith.constant 1 : index
    %c6_417 = arith.constant 6 : index
    %c6_418 = arith.constant 6 : index
    %608 = vector.load %arg4[%c1_416, %c6_417, %c6_418] : memref<2x22x22xf32, #tpu.memory_space<vmem>>, vector<1x16x16xf32>
    %609 = vector.shape_cast %608 : vector<1x16x16xf32> to vector<16x16xf32>
    %610 = vector.broadcast %607 : vector<1x16xf32> to vector<16x16xf32>
    %611 = arith.mulf %610, %609 : vector<16x16xf32>
    %612 = arith.addf %606, %611 : vector<16x16xf32>
    %cst_419 = arith.constant 0.000000e+00 : f32
    %613 = vector.broadcast %cst_419 : f32 to vector<16x16xf32>
    %614 = arith.subf %613, %612 : vector<16x16xf32>
    %615 = math.exp %614 : vector<16x16xf32>
    %cst_420 = arith.constant 1.000000e+00 : f32
    %616 = vector.broadcast %cst_420 : f32 to vector<16x16xf32>
    %617 = arith.addf %616, %615 : vector<16x16xf32>
    %cst_421 = arith.constant 1.000000e+00 : f32
    %618 = vector.broadcast %cst_421 : f32 to vector<16x16xf32>
    %619 = arith.divf %618, %617 : vector<16x16xf32>
    %c0_422 = arith.constant 0 : index
    %c0_423 = arith.constant 0 : index
    %c0_424 = arith.constant 0 : index
    %620 = vector.load %arg3[%c0_422, %c0_423, %c0_424] : memref<1x16x16xf32, #tpu.memory_space<vmem>>, vector<1x16x16xf32>
    %621 = vector.shape_cast %620 : vector<1x16x16xf32> to vector<16x16xf32>
    %622 = vector.shape_cast %619 : vector<16x16xf32> to vector<1x16x16xf32>
    tpu.vector_store %arg3[%c0_422, %c0_423, %c0_424], %622 {strides = array<i32>} : memref<1x16x16xf32, #tpu.memory_space<vmem>>, vector<1x16x16xf32>,
    return
  }
  func.func @transform_0(%arg0: i32) -> (i32, i32, i32, i32) {
    %c0_i32 = arith.constant 0 : i32
    %c0_i32_0 = arith.constant 0 : i32
    %c0_i32_1 = arith.constant 0 : i32
    %c0_i32_2 = arith.constant 0 : i32
    return %arg0, %c0_i32, %c0_i32_0, %c0_i32_1 : i32, i32, i32, i32
  }
  func.func @transform_1(%arg0: i32) -> (i32, i32) {
    %c0_i32 = arith.constant 0 : i32
    %c0_i32_0 = arith.constant 0 : i32
    %c0_i32_1 = arith.constant 0 : i32
    return %c0_i32, %c0_i32_0 : i32, i32
  }
  func.func @transform_2(%arg0: i32) -> (i32, i32, i32) {
    %c0_i32 = arith.constant 0 : i32
    %c0_i32_0 = arith.constant 0 : i32
    %c0_i32_1 = arith.constant 0 : i32
    return %arg0, %c0_i32, %c0_i32_0 : i32, i32, i32
  }
}

</mosaic_0001>

<bundles_post_ra>
// kernel: tpu_custom_call.1
= control target key start
LH: loop header
LB: loop body
LE: loop exit
PB: predicated region body
PF: predicated region fallthrough
CT: control target
= control target key end

     0   :  { %7 = vsyncpa [#allocation4], 0  ;;  %s3017_s0 = inlined_call_operand.hbm [shape: f32[2,4,16,16], index: 0, kind: input, shape index: {}]   ;;  %s3018_s1 = inlined_call_operand.vmem [shape: f32[98,16], index: 1, kind: input, shape index: {}]   ;;  %s3019_s2 = inlined_call_operand.hbm [shape: f32[2,16,16], index: 2, kind: output, shape index: {}]  }
   0x1   :  { %9 = vsyncpa [#allocation4 + $0x1], 0 }
   0x2   :  { %10 = vsyncpa [#allocation5], 0 }
   0x3   :  { %12 = vsyncpa [#allocation5 + $0x1], 0  ;;  %s2074_s9 = smov 0   ;;  %s2076_s10 = smov 0  }
   0x4   :  { %s2078_s11 = smov 0   ;;  %s2080_s12 = smov 0  }
   0x5 LB: > { %s2095_s13 = sadd.s32 4294967295, %s2043_s12   ;;  %s1761_s14 = sadd.s32 4294967294, %s2043_s12   ;;  %s2043_s12 = sphi %s2080_s12, %s3032_s12   ;;  %s2039_s11 = sphi %s2078_s11, %s3031_s11   ;;  %s2035_s10 = sphi %s2076_s10, %s3030_s10   ;;  %s2031_s9 = sphi %s2074_s9, %s3029_s9  }
   0x6   : > { %s2099_s15 = sadd.s32 1, %s2043_s12   ;;  %s25_s16 = sadd.s32 1, %s2039_s11 }
   0x7   : > { %s22_s17 = ssub.s32 %s2043_s12, %s2099_s15  ;;  %p32_p0 = scmp.ne.s32.totalorder %s2039_s11, %s2035_s10 }
   0x8   : > { %p23_p1 = scmp.eq.s32.totalorder %s22_s17, 0  ;;  %p33_p2 = scmp.eq.s32.totalorder %s2043_s12, 0 }
   0x9   : > { %p38_p3 = scmp.ne.s32.totalorder %s2035_s10, %s2031_s9  ;;  %p39_p4 = scmp.eq.s32.totalorder %s2095_s13, 0 }
   0xa   : > { %s2111_s18 = scalar_select %p23_p1, %s2039_s11, %s25_s16  }
   0xb   : > { %p2113_p5 = por %p33_p2, %p32_p0  ;;  %p2117_p6 = por %p39_p4, %p38_p3 }
   0xc   : > { %p83_p7 = scmp.eq.s32.totalorder %s2095_s13, 1  ;;  %p89_p8 = scmp.eq.s32.totalorder %s1761_s14, 1 }
   0xd   : > { %p1893_p10 = scmp.lt.s32.totalorder %s2043_s12, 2  ;;  %s112_s23 = sand.u32 1, %s2039_s11  }
   0xe   : > { %p2124_p11 = por %p83_p7, %p32_p0  ;;  %p2128_p12 = por %p89_p8, %p38_p3 }
   0xf   : > { %s1879_s24 = sshll.u32 %s2043_s12, 10  ;;  %s1764_s25 = sshll.u32 %s112_s23, 6 }
  0x10   : > { %s3023_s21 = scalar_select %p2124_p11, 1, 0 }
  0x11   : > { %s3024_s22 = scalar_select %p2128_p12, 1, 0 }
  0x12   : > { %s2137_s28 = scalar_lea.hbm %s3017_s0, %s1879_s24  ;;  %s116_s29 = scalar_lea.vmem [#allocation3], %s1764_s25 }
  0x13   : > { %s123_s30 = sshll.u32 %s116_s29, 4  ;;  %p2141_p13 = pnand %p1893_p10, %p2113_p5  ;;  %s2145_s30 = int_to_ptr.vmem [resolvable:$true] %s123_s30 }
  0x14   : > { %s2147_s4 = scalar_lea.sflag [#allocation4], %s112_s23  ;;  %s1947_s5 = scalar_lea.hbm %s2137_s28, 1024 }
  0x15   : > { %p1948_p0 = scmp.ne.s32.totalorder %s2137_s28, %s1947_s5  ;;  %p1949_p1 = pneg %p2141_p13 }
  0x16   : > { %s1952_s8 = scalar_lea.hbm %s3017_s0, 2048  ;;  %p1953_p4 = scmp.lt.u32.totalorder %s2137_s28, %s3017_s0 }
  0x17   : > { %p1950_p2 = pnand %p1949_p1, %p1948_p0  ;;  %p1954_p5 = scmp.lt.u32.totalorder %s1952_s8, %s1947_s5 }
  0x18   : > { %p1956_p8 = scmp.lt.u32.totalorder %s1947_s5, %s2137_s28 }
  0x19   : > { %p1951_p3 = pneg %p1950_p2  ;;  %p1955_p7 = por %p1954_p5, %p1953_p4 }
  0x1b   : > { %p1957_p10 = por %p1956_p8, %p1955_p7 }
  0x1d   : > { %p1958_p9 = pnand %p1957_p10, %p1951_p3 }
  0x1f   : > { %1961 = shalt.err (!%p1958_p9)
}
  0x20   : > { %s1962_s17 = scalar_lea.vmem %s2145_s30, 1024  ;;  %s2045_s19 = smov [#allocation3]  }
  0x21   : > { %p1963_p0 = scmp.ne.s32.totalorder %s2145_s30, %s1962_s17  ;;  %s1967_s23 = sshll.u32 %s2045_s19, 4  ;;  %s1968_s23 = int_to_ptr.vmem [resolvable:$false] %s1967_s23 }
  0x22   : > { %s1969_s24 = scalar_lea.vmem %s1968_s23, 2048  ;;  %p1970_p11 = scmp.lt.s32.totalorder %s2145_s30, %s1968_s23 }
  0x23   : > { %p1965_p2 = pnand %p1963_p0, %p1949_p1  ;;  %p1971_p4 = scmp.lt.s32.totalorder %s1969_s24, %s1962_s17 }
  0x25   : > { %p1966_p12 = pneg %p1965_p2  ;;  %p1972_p5 = por %p1971_p4, %p1970_p11 }
  0x27   : > { %p1973_p7 = pnand %p1972_p5, %p1966_p12 }
  0x29   : > { %1976 = shalt.err (!%p1973_p7)
}
  0x2a   : > { %s2046_s25 = smov 128   ;;  %s2047_s26 = smov 8  }
  0x2b   : > { %1888 = dma.hbm_to_vmem [thread:$0]  (!%p2141_p13), %s2137_s28, 1024, %s2145_s30, %s2147_s4, %s2046_s25, %s2046_s25, %s2047_s26  }
  0x2c   : > { %p1767_p9 = scmp.ge.s32.totalorder %s2043_s12, 1  ;;  %p131_p1 = scmp.lt.s32.totalorder %s2043_s12, 3 }
  0x2e   : > { %p132_p3 = pnand %p1767_p9, %p131_p1 }
  0x2f   : > { %s2178_s27 = sand.u32 (!%p132_p3), 1, %s2035_s10  }
  0x30   : > { %135 = sbr.rel (%p132_p3) target bundleno = 686 (0x2ae), region = 28  ;;  %s1768_s29 = sshll.u32 (!%p132_p3), %s2178_s27, 6 }
  0x31   : > { %s138_s5 = scalar_lea.sflag (!%p132_p3), [#allocation4], %s2178_s27  ;;  %s141_s6 = scalar_lea.vmem (!%p132_p3), [#allocation3], %s1768_s29 }
  0x37   : > { %2022 = dma.done.wait (%p2117_p6), %s138_s5, 1024  }
  0x38   : > { %2024 = vsyncadd (%p2117_p6), %s138_s5, 4294966272  ;;  %vm187_vm0 = vcmask 179200   ;;  %v2048_v0 = vmov 0.0   ;;  %vm190_vm1 = vcmask 177152   ;;  %v162_v1 = vld [vmem:[%s141_s6] sm:$0xff]  ;;  %v1770_v2 = vld [vmem:[%s141_s6 + $0x10] sm:$0xff] }
  0x39   : > { %188 = vst.msk [vmem:[#allocation2] sm:$0xff] %vm187_vm0, %v2048_v0  ;;  %189 = vst.msk [vmem:[#allocation2 + $0x8] sm:$0xff] %vm187_vm0, %v2048_v0  ;;  %v1772_v3 = vld [vmem:[%s141_s6 + $0x20] sm:$0xff]  ;;  %v167_v4 = vadd.f32 %v1770_v2, %v162_v1  ;;  %v163_v5 = vld [vmem:[%s141_s6 + $0x8] sm:$0xff]  ;;  %v169_v7 = vmax.f32 %v162_v1, %v1770_v2  ;;  %s2049_s20 = smov 3   ;;  %vm203_vm2 = vcmask 154648  }
  0x3a   : > { %192 = vst.msk [vmem:[#allocation2 + $0x18] sm:$0xff] %vm187_vm0, %v2048_v0  ;;  %193 = vst.msk [vmem:[#allocation2 + $0x20] sm:$0xff] %vm187_vm0, %v2048_v0  ;;  %v1771_v6 = vld [vmem:[%s141_s6 + $0x18] sm:$0xff]  ;;  %v1774_v8 = vld [vmem:[%s141_s6 + $0x30] sm:$0xff]  ;;  %s2050_s28 = smov 127   ;;  %s2051_s30 = smov 126  }
  0x3b   : > { %191 = vst.msk [vmem:[#allocation2 + $0x10] sm:$0x3f] %vm190_vm1, %v2048_v0  ;;  %194 = vst.msk [vmem:[#allocation2 + $0x28] sm:$0x3f] %vm190_vm1, %v2048_v0  ;;  %v168_v9 = vadd.f32 %v1771_v6, %v163_v5  ;;  %v1773_v10 = vld [vmem:[%s141_s6 + $0x28] sm:$0xff]  ;;  %v170_v11 = vmax.f32 %v163_v5, %v1771_v6  ;;  %v174_v12 = vadd.f32 %v1772_v3, %v167_v4  ;;  %v1775_v13 = vld [vmem:[%s141_s6 + $0x38] sm:$0xff] }
  0x3c   : > { %v176_v14 = vmax.f32 %v169_v7, %v1772_v3  ;;  %s2052_s3 = smov 125   ;;  %s2053_s4 = smov 124   ;;  %v1777_v41 = vld [vmem:[%s3018_s1 + $0x1] ss:$0 sm:$0xff]  ;;  %v1776_v42 = vld [vmem:[%s3018_s1] ss:$0 sm:$0xff] }
  0x3d   : > { %v175_v15 = vadd.f32 %v1773_v10, %v168_v9  ;;  %v177_v16 = vmax.f32 %v170_v11, %v1773_v10  ;;  %v181_v17 = vadd.f32 %v1774_v8, %v174_v12  ;;  %s2054_s7 = smov 123   ;;  %s2055_s8 = smov 122   ;;  %v1778_v43 = vld [vmem:[%s3018_s1 + $0x2] ss:$0 sm:$0xff]  ;;  %v1779_v48 = vld [vmem:[%s3018_s1 + $0x3] ss:$0 sm:$0xff] }
  0x3e   : > { %v183_v18 = vmax.f32 %v176_v14, %v1774_v8  ;;  %v1780_v52 = vld [vmem:[%s3018_s1 + $0x4] ss:$0 sm:$0xff]  ;;  %v1781_v57 = vld [vmem:[%s3018_s1 + $0x5] ss:$0 sm:$0xff]  ;;  %v1782_v4 = vld [vmem:[%s3018_s1 + $0x6] ss:$0 sm:$0xff] }
  0x3f   : > { %v182_v19 = vadd.f32 %v1775_v13, %v175_v15  ;;  %v185_v20 = vmul.f32 0.25, %v181_v17  ;;  %v184_v21 = vmax.f32 %v177_v16, %v1775_v13  ;;  %v1783_v8 = vld [vmem:[%s3018_s1 + $0x7] ss:$0 sm:$0xff]  ;;  %s1769_s6 = sshll.u32 %s2178_s27, 4  ;;  %vm1671_vm3 = vcmask 130048   ;;  %p3026_p11 = scmp.ne.s32.totalorder %s3023_s21, 0 }
  0x40   : > { %208 = vrot.lane.b32.xlu1 %v183_v18, %s2049_s20 }
  0x41   : > { %197 = vrot.lane.b32.xlu0 %v185_v20, %s2049_s20  ;;  %v186_v22 = vmul.f32 0.25, %v182_v19 }
  0x44   : > { %210 = vrot.lane.b32.xlu1 %v184_v21, %s2049_s20 }
  0x45   : > { %199 = vrot.lane.b32.xlu0 %v186_v22, %s2049_s20  ;;  %s1880_s20 = sshll.u32 %s2095_s13, 8  ;;  %s2056_s13 = smov [#allocation6]  }
  0x46   : > { %s1981_s17 = sshll.u32 %s2056_s13, 4  ;;  %s1982_s17 = int_to_ptr.vmem [resolvable:$false] %s1981_s17 }
  0xb2   : > { %v209_v23 = vpop.permute.xlu1 %208 }
  0xb3   : > { %215 = vst.msk [vmem:[#allocation2 + $0x1b] sm:$0xff] %vm203_vm2, %v209_v23  ;;  %v198_v24 = vpop.permute.xlu0 %197 }
  0xb4   : > { %204 = vst.msk [vmem:[#allocation2 + $0x3] sm:$0xff] %vm203_vm2, %v198_v24 }
  0xb6   : > { %v211_v25 = vpop.permute.xlu1 %210 }
  0xb7   : > { %216 = vst.msk [vmem:[#allocation2 + $0x23] sm:$0xff] %vm203_vm2, %v211_v25  ;;  %v200_v26 = vpop.permute.xlu0 %199 }
  0xb8   : > { %205 = vst.msk [vmem:[#allocation2 + $0xb] sm:$0xff] %vm203_vm2, %v200_v26 }
  0xbb   : > { %v2186_v27 = vld [vmem:[#allocation2] sm:$0xff] }
  0xbc   : > { %235 = vrot.lane.b32.xlu0 %v2186_v27, %s2050_s28  ;;  %v2212_v29 = vld [vmem:[#allocation2 + $0x1] sm:$0xff]  ;;  %v224_v49 = vmul.f32 %v1776_v42, %v2186_v27 }
  0xbd   : > { %v2240_v31 = vld [vmem:[#allocation2 + $0x2] sm:$0xff]  ;;  %v327_v15 = vmul.f32 %v1783_v8, %v2212_v29 }
  0xbe   : > { %v2268_v33 = vld [vmem:[#allocation2 + $0x3] sm:$0xff] }
  0xbf   : > { %v2190_v28 = vld [vmem:[#allocation2 + $0x8] sm:$0xff] }
  0xc0   : > { %250 = vrot.lane.b32.xlu0 %v2186_v27, %s2051_s30  ;;  %237 = vrot.lane.b32.xlu1 %v2190_v28, %s2050_s28  ;;  %v2218_v30 = vld [vmem:[#allocation2 + $0x9] sm:$0xff]  ;;  %v225_v58 = vmul.f32 %v1776_v42, %v2190_v28 }
  0xc1   : > { %v2246_v32 = vld [vmem:[#allocation2 + $0xa] sm:$0xff]  ;;  %v328_v23 = vmul.f32 %v1783_v8, %v2218_v30 }
  0xc2   : > { %v2274_v34 = vld [vmem:[#allocation2 + $0xb] sm:$0xff] }
  0xc3   : > { %v2296_v35 = vld [vmem:[#allocation2 + $0x4] sm:$0xff]  ;;  %v2302_v36 = vld [vmem:[#allocation2 + $0xc] sm:$0xff] }
  0xc4   : > { %265 = vrot.lane.b32.xlu0 %v2186_v27, %s2052_s3  ;;  %252 = vrot.lane.b32.xlu1 %v2190_v28, %s2051_s30  ;;  %v2324_v40 = vld [vmem:[#allocation2 + $0x5] sm:$0xff]  ;;  %v2339_v46 = vld [vmem:[#allocation2 + $0xd] sm:$0xff] }
  0xc8   : > { %280 = vrot.lane.b32.xlu0 %v2186_v27, %s2053_s4  ;;  %267 = vrot.lane.b32.xlu1 %v2190_v28, %s2052_s3 }
  0xcc   : > { %295 = vrot.lane.b32.xlu0 %v2186_v27, %s2054_s7  ;;  %282 = vrot.lane.b32.xlu1 %v2190_v28, %s2053_s4 }
  0xd0   : > { %310 = vrot.lane.b32.xlu0 %v2186_v27, %s2055_s8  ;;  %297 = vrot.lane.b32.xlu1 %v2190_v28, %s2054_s7  ;;  %v2380_v27 = vld [vmem:[#allocation2 + $0x6] sm:$0xff] }
  0xd4   : > { %338 = vrot.lane.b32.xlu0 %v2212_v29, %s2050_s28  ;;  %312 = vrot.lane.b32.xlu1 %v2190_v28, %s2055_s8 }
  0xd8   : > { %353 = vrot.lane.b32.xlu0 %v2212_v29, %s2051_s30  ;;  %340 = vrot.lane.b32.xlu1 %v2218_v30, %s2050_s28 }
  0xdc   : > { %368 = vrot.lane.b32.xlu0 %v2212_v29, %s2052_s3  ;;  %355 = vrot.lane.b32.xlu1 %v2218_v30, %s2051_s30 }
  0xe0   : > { %383 = vrot.lane.b32.xlu0 %v2212_v29, %s2053_s4  ;;  %370 = vrot.lane.b32.xlu1 %v2218_v30, %s2052_s3 }
  0xe4   : > { %398 = vrot.lane.b32.xlu0 %v2212_v29, %s2054_s7  ;;  %385 = vrot.lane.b32.xlu1 %v2218_v30, %s2053_s4 }
  0xe8   : > { %413 = vrot.lane.b32.xlu0 %v2212_v29, %s2055_s8  ;;  %400 = vrot.lane.b32.xlu1 %v2218_v30, %s2054_s7 }
  0xec   : > { %441 = vrot.lane.b32.xlu0 %v2240_v31, %s2050_s28  ;;  %415 = vrot.lane.b32.xlu1 %v2218_v30, %s2055_s8 }
  0xf0   : > { %456 = vrot.lane.b32.xlu0 %v2240_v31, %s2051_s30  ;;  %443 = vrot.lane.b32.xlu1 %v2246_v32, %s2050_s28 }
  0xf4   : > { %471 = vrot.lane.b32.xlu0 %v2240_v31, %s2052_s3  ;;  %458 = vrot.lane.b32.xlu1 %v2246_v32, %s2051_s30 }
  0xf8   : > { %486 = vrot.lane.b32.xlu0 %v2240_v31, %s2053_s4  ;;  %473 = vrot.lane.b32.xlu1 %v2246_v32, %s2052_s3 }
  0xfc   : > { %501 = vrot.lane.b32.xlu0 %v2240_v31, %s2054_s7  ;;  %488 = vrot.lane.b32.xlu1 %v2246_v32, %s2053_s4 }
 0x100   : > { %516 = vrot.lane.b32.xlu0 %v2240_v31, %s2055_s8  ;;  %503 = vrot.lane.b32.xlu1 %v2246_v32, %s2054_s7 }
 0x104   : > { %544 = vrot.lane.b32.xlu0 %v2268_v33, %s2050_s28  ;;  %518 = vrot.lane.b32.xlu1 %v2246_v32, %s2055_s8 }
 0x108   : > { %559 = vrot.lane.b32.xlu0 %v2268_v33, %s2051_s30  ;;  %546 = vrot.lane.b32.xlu1 %v2274_v34, %s2050_s28 }
 0x10c   : > { %574 = vrot.lane.b32.xlu0 %v2268_v33, %s2052_s3  ;;  %561 = vrot.lane.b32.xlu1 %v2274_v34, %s2051_s30 }
 0x110   : > { %589 = vrot.lane.b32.xlu0 %v2268_v33, %s2053_s4  ;;  %576 = vrot.lane.b32.xlu1 %v2274_v34, %s2052_s3 }
 0x114   : > { %604 = vrot.lane.b32.xlu0 %v2268_v33, %s2054_s7  ;;  %591 = vrot.lane.b32.xlu1 %v2274_v34, %s2053_s4 }
 0x118   : > { %619 = vrot.lane.b32.xlu0 %v2268_v33, %s2055_s8  ;;  %606 = vrot.lane.b32.xlu1 %v2274_v34, %s2054_s7 }
 0x11c   : > { %647 = vrot.lane.b32.xlu0 %v2296_v35, %s2050_s28  ;;  %621 = vrot.lane.b32.xlu1 %v2274_v34, %s2055_s8 }
 0x120   : > { %662 = vrot.lane.b32.xlu0 %v2296_v35, %s2051_s30  ;;  %649 = vrot.lane.b32.xlu1 %v2302_v36, %s2050_s28 }
 0x124   : > { %677 = vrot.lane.b32.xlu0 %v2296_v35, %s2052_s3  ;;  %664 = vrot.lane.b32.xlu1 %v2302_v36, %s2051_s30 }
 0x128   : > { %692 = vrot.lane.b32.xlu0 %v2296_v35, %s2053_s4  ;;  %679 = vrot.lane.b32.xlu1 %v2302_v36, %s2052_s3 }
 0x12c   : > { %707 = vrot.lane.b32.xlu0 %v2296_v35, %s2054_s7  ;;  %694 = vrot.lane.b32.xlu1 %v2302_v36, %s2053_s4 }
 0x12e   : > { %v236_v37 = vpop.permute.xlu0 %235 }
 0x12f   : > { %v241_v47 = vmul.f32 %v1777_v41, %v236_v37 }
 0x130   : > { %722 = vrot.lane.b32.xlu0 %v2296_v35, %s2055_s8  ;;  %709 = vrot.lane.b32.xlu1 %v2302_v36, %s2054_s7 }
 0x131   : > { %v243_v54 = vadd.f32 %v241_v47, %v224_v49 }
 0x132   : > { %v238_v38 = vpop.permute.xlu1 %237  ;;  %v251_v39 = vpop.permute.xlu0 %250 }
 0x133   : > { %v256_v50 = vmul.f32 %v1778_v43, %v251_v39  ;;  %v242_v55 = vmul.f32 %v1777_v41, %v238_v38  ;;  %v2386_v38 = vld [vmem:[#allocation2 + $0xe] sm:$0xff] }
 0x134   : > { %750 = vrot.lane.b32.xlu0 %v2324_v40, %s2050_s28  ;;  %724 = vrot.lane.b32.xlu1 %v2302_v36, %s2055_s8 }
 0x135   : > { %v258_v59 = vadd.f32 %v256_v50, %v243_v54  ;;  %v244_v0 = vadd.f32 %v242_v55, %v225_v58  ;;  %v2414_v50 = vld [vmem:[#allocation2 + $0x18] sm:$0xff] }
 0x136   : > { %v253_v44 = vpop.permute.xlu1 %252  ;;  %v266_v45 = vpop.permute.xlu0 %265 }
 0x137   : > { %v271_v56 = vmul.f32 %v1779_v48, %v266_v45  ;;  %v257_v60 = vmul.f32 %v1778_v43, %v253_v44 }
 0x138   : > { %765 = vrot.lane.b32.xlu0 %v2324_v40, %s2051_s30  ;;  %752 = vrot.lane.b32.xlu1 %v2339_v46, %s2050_s28 }
 0x139   : > { %v273_v1 = vadd.f32 %v271_v56, %v258_v59  ;;  %v259_v5 = vadd.f32 %v257_v60, %v244_v0  ;;  %v2430_v56 = vld [vmem:[#allocation2 + $0x20] sm:$0xff]  ;;  %v1787_v59 = vld [vmem:[%s3018_s1 + $0xb] ss:$0 sm:$0xff] }
 0x13a   : > { %v268_v51 = vpop.permute.xlu1 %267  ;;  %v281_v53 = vpop.permute.xlu0 %280 }
 0x13b   : > { %v286_v61 = vmul.f32 %v1780_v52, %v281_v53  ;;  %v272_v2 = vmul.f32 %v1779_v48, %v268_v51  ;;  %v1784_v51 = vld [vmem:[%s3018_s1 + $0x8] ss:$0 sm:$0xff] }
 0x13c   : > { %780 = vrot.lane.b32.xlu0 %v2324_v40, %s2052_s3  ;;  %767 = vrot.lane.b32.xlu1 %v2339_v46, %s2051_s30 }
 0x13d   : > { %v288_v6 = vadd.f32 %v286_v61, %v273_v1  ;;  %v274_v11 = vadd.f32 %v272_v2, %v259_v5  ;;  %v1788_v1 = vld [vmem:[%s3018_s1 + $0xc] ss:$0 sm:$0xff]  ;;  %v1789_v5 = vld [vmem:[%s3018_s1 + $0xd] ss:$0 sm:$0xff] }
 0x13e   : > { %v283_v62 = vpop.permute.xlu1 %282  ;;  %v296_v63 = vpop.permute.xlu0 %295 }
 0x13f   : > { %v301_v3 = vmul.f32 %v1781_v57, %v296_v63  ;;  %v287_v7 = vmul.f32 %v1780_v52, %v283_v62  ;;  %v1785_v52 = vld [vmem:[%s3018_s1 + $0x9] ss:$0 sm:$0xff] }
 0x140   : > { %795 = vrot.lane.b32.xlu0 %v2324_v40, %s2053_s4  ;;  %782 = vrot.lane.b32.xlu1 %v2339_v46, %s2052_s3 }
 0x141   : > { %v303_v12 = vadd.f32 %v301_v3, %v288_v6  ;;  %v289_v16 = vadd.f32 %v287_v7, %v274_v11 }
 0x142   : > { %v298_v9 = vpop.permute.xlu1 %297  ;;  %v311_v10 = vpop.permute.xlu0 %310 }
 0x143   : > { %v302_v13 = vmul.f32 %v1781_v57, %v298_v9  ;;  %v316_v14 = vmul.f32 %v1782_v4, %v311_v10  ;;  %v1786_v57 = vld [vmem:[%s3018_s1 + $0xa] ss:$0 sm:$0xff] }
 0x144   : > { %810 = vrot.lane.b32.xlu0 %v2324_v40, %s2054_s7  ;;  %797 = vrot.lane.b32.xlu1 %v2339_v46, %s2053_s4 }
 0x145   : > { %v318_v17 = vadd.f32 %v316_v14, %v303_v12  ;;  %v304_v20 = vadd.f32 %v302_v13, %v289_v16 }
 0x146   : > { %v313_v18 = vpop.permute.xlu1 %312  ;;  %v339_v19 = vpop.permute.xlu0 %338 }
 0x147   : > { %v329_v21 = vadd.f32 %v327_v15, %v318_v17  ;;  %v317_v22 = vmul.f32 %v1782_v4, %v313_v18  ;;  %v344_v55 = vmul.f32 %v1784_v51, %v339_v19 }
 0x148   : > { %825 = vrot.lane.b32.xlu0 %v2324_v40, %s2055_s8  ;;  %812 = vrot.lane.b32.xlu1 %v2339_v46, %s2054_s7 }
 0x149   : > { %v319_v24 = vadd.f32 %v317_v22, %v304_v20  ;;  %v346_v62 = vadd.f32 %v344_v55, %v329_v21  ;;  %v1790_v21 = vld [vmem:[%s3018_s1 + $0xe] ss:$0 sm:$0xff]  ;;  %v1794_v55 = vld [vmem:[%s3018_s1 + $0x12] ss:$0 sm:$0xff] }
 0x14a   : > { %v341_v25 = vpop.permute.xlu1 %340  ;;  %v354_v26 = vpop.permute.xlu0 %353 }
 0x14b   : > { %v330_v28 = vadd.f32 %v328_v23, %v319_v24  ;;  %v359_v58 = vmul.f32 %v1785_v52, %v354_v26  ;;  %v345_v63 = vmul.f32 %v1784_v51, %v341_v25  ;;  %v1791_v25 = vld [vmem:[%s3018_s1 + $0xf] ss:$0 sm:$0xff] }
 0x14c   : > { %853 = vrot.lane.b32.xlu0 %v2380_v27, %s2050_s28  ;;  %827 = vrot.lane.b32.xlu1 %v2339_v46, %s2055_s8 }
 0x14d   : > { %v361_v2 = vadd.f32 %v359_v58, %v346_v62  ;;  %v347_v8 = vadd.f32 %v345_v63, %v330_v28 }
 0x14e   : > { %v356_v29 = vpop.permute.xlu1 %355  ;;  %v369_v37 = vpop.permute.xlu0 %368 }
 0x14f   : > { %v374_v0 = vmul.f32 %v1786_v57, %v369_v37  ;;  %v360_v3 = vmul.f32 %v1785_v52, %v356_v29  ;;  %v430_v29 = vmul.f32 %v1790_v21, %v2240_v31  ;;  %v2490_v52 = vld [vmem:[#allocation2 + $0x19] sm:$0xff] }
 0x150   : > { %868 = vrot.lane.b32.xlu0 %v2380_v27, %s2051_s30  ;;  %855 = vrot.lane.b32.xlu1 %v2386_v38, %s2050_s28 }
 0x151   : > { %v376_v9 = vadd.f32 %v374_v0, %v361_v2  ;;  %v362_v12 = vadd.f32 %v360_v3, %v347_v8  ;;  %v2506_v2 = vld [vmem:[#allocation2 + $0x21] sm:$0xff]  ;;  %v1796_v3 = vld [vmem:[%s3018_s1 + $0x14] ss:$0 sm:$0xff] }
 0x152   : > { %v371_v30 = vpop.permute.xlu1 %370  ;;  %v384_v39 = vpop.permute.xlu0 %383 }
 0x153   : > { %v389_v4 = vmul.f32 %v1787_v59, %v384_v39  ;;  %v375_v10 = vmul.f32 %v1786_v57, %v371_v30  ;;  %v1792_v30 = vld [vmem:[%s3018_s1 + $0x10] ss:$0 sm:$0xff] }
 0x154   : > { %883 = vrot.lane.b32.xlu0 %v2380_v27, %s2052_s3  ;;  %870 = vrot.lane.b32.xlu1 %v2386_v38, %s2051_s30 }
 0x155   : > { %v391_v13 = vadd.f32 %v389_v4, %v376_v9  ;;  %v377_v18 = vadd.f32 %v375_v10, %v362_v12 }
 0x156   : > { %v386_v41 = vpop.permute.xlu1 %385  ;;  %v399_v42 = vpop.permute.xlu0 %398 }
 0x157   : > { %v404_v11 = vmul.f32 %v1788_v1, %v399_v42  ;;  %v390_v14 = vmul.f32 %v1787_v59, %v386_v41 }
 0x158   : > { %898 = vrot.lane.b32.xlu0 %v2380_v27, %s2053_s4  ;;  %885 = vrot.lane.b32.xlu1 %v2386_v38, %s2052_s3 }
 0x159   : > { %v406_v19 = vadd.f32 %v404_v11, %v391_v13  ;;  %v392_v22 = vadd.f32 %v390_v14, %v377_v18 }
 0x15a   : > { %v401_v43 = vpop.permute.xlu1 %400  ;;  %v414_v44 = vpop.permute.xlu0 %413 }
 0x15b   : > { %v419_v15 = vmul.f32 %v1789_v5, %v414_v44  ;;  %v405_v20 = vmul.f32 %v1788_v1, %v401_v43  ;;  %v1793_v43 = vld [vmem:[%s3018_s1 + $0x11] ss:$0 sm:$0xff] }
 0x15c   : > { %913 = vrot.lane.b32.xlu0 %v2380_v27, %s2054_s7  ;;  %900 = vrot.lane.b32.xlu1 %v2386_v38, %s2053_s4 }
 0x15d   : > { %v421_v23 = vadd.f32 %v419_v15, %v406_v19  ;;  %v407_v37 = vadd.f32 %v405_v20, %v392_v22 }
 0x15e   : > { %v416_v45 = vpop.permute.xlu1 %415  ;;  %v2404_v47 = vpop.permute.xlu0 %441 }
 0x15f   : > { %v420_v24 = vmul.f32 %v1789_v5, %v416_v45  ;;  %v432_v39 = vadd.f32 %v430_v29, %v421_v23  ;;  %v447_v42 = vmul.f32 %v1791_v25, %v2404_v47  ;;  %v431_v45 = vmul.f32 %v1790_v21, %v2246_v32  ;;  %v1799_v21 = vld [vmem:[%s3018_s1 + $0x17] ss:$0 sm:$0xff]  ;;  %v1800_v29 = vld [vmem:[%s3018_s1 + $0x18] ss:$0 sm:$0xff] }
 0x160   : > { %928 = vrot.lane.b32.xlu0 %v2380_v27, %s2055_s8  ;;  %915 = vrot.lane.b32.xlu1 %v2386_v38, %s2054_s7 }
 0x161   : > { %v422_v41 = vadd.f32 %v420_v24, %v407_v37  ;;  %v449_v57 = vadd.f32 %v447_v42, %v432_v39 }
 0x162   : > { %v2410_v48 = vpop.permute.xlu1 %443  ;;  %v2412_v49 = vpop.permute.xlu0 %456 }
 0x163   : > { %v462_v51 = vmul.f32 %v1792_v30, %v2412_v49  ;;  %v433_v47 = vadd.f32 %v431_v45, %v422_v41  ;;  %v448_v58 = vmul.f32 %v1791_v25, %v2410_v48  ;;  %v1795_v49 = vld [vmem:[%s3018_s1 + $0x13] ss:$0 sm:$0xff] }
 0x164   : > { %956 = vrot.lane.b32.xlu0 %v2414_v50, %s2050_s28  ;;  %930 = vrot.lane.b32.xlu1 %v2386_v38, %s2055_s8 }
 0x165   : > { %v464_v63 = vadd.f32 %v462_v51, %v449_v57  ;;  %v450_v48 = vadd.f32 %v448_v58, %v433_v47  ;;  %v1802_v51 = vld [vmem:[%s3018_s1 + $0x1a] ss:$0 sm:$0xff]  ;;  %v1803_v47 = vld [vmem:[%s3018_s1 + $0x1b] ss:$0 sm:$0xff] }
 0x166   : > { %v2426_v53 = vpop.permute.xlu1 %458  ;;  %v2428_v54 = vpop.permute.xlu0 %471 }
 0x167   : > { %v477_v32 = vmul.f32 %v1793_v43, %v2428_v54  ;;  %v463_v0 = vmul.f32 %v1792_v30, %v2426_v53  ;;  %v1801_v30 = vld [vmem:[%s3018_s1 + $0x19] ss:$0 sm:$0xff] }
 0x168   : > { %971 = vrot.lane.b32.xlu0 %v2414_v50, %s2051_s30  ;;  %958 = vrot.lane.b32.xlu1 %v2430_v56, %s2050_s28 }
 0x169   : > { %v479_v54 = vadd.f32 %v477_v32, %v464_v63  ;;  %v2558_v63 = vld [vmem:[#allocation2 + $0x1a] sm:$0xff] }
 0x16a   : > { %v2442_v60 = vpop.permute.xlu1 %473  ;;  %v2444_v61 = vpop.permute.xlu0 %486 }
 0x16b   : > { %v492_v1 = vmul.f32 %v1794_v55, %v2444_v61  ;;  %v478_v4 = vmul.f32 %v1793_v43, %v2442_v60  ;;  %v465_v61 = vadd.f32 %v463_v0, %v450_v48  ;;  %v1797_v60 = vld [vmem:[%s3018_s1 + $0x15] ss:$0 sm:$0xff] }
 0x16c   : > { %986 = vrot.lane.b32.xlu0 %v2414_v50, %s2052_s3  ;;  %973 = vrot.lane.b32.xlu1 %v2430_v56, %s2051_s30 }
 0x16d   : > { %v494_v9 = vadd.f32 %v492_v1, %v479_v54  ;;  %v480_v12 = vadd.f32 %v478_v4, %v465_v61  ;;  %v2564_v61 = vld [vmem:[#allocation2 + $0x22] sm:$0xff] }
 0x16e   : > { %v2456_v6 = vpop.permute.xlu1 %488  ;;  %v502_v7 = vpop.permute.xlu0 %501 }
 0x16f   : > { %v507_v5 = vmul.f32 %v1795_v49, %v502_v7  ;;  %v493_v10 = vmul.f32 %v1794_v55, %v2456_v6  ;;  %v1798_v6 = vld [vmem:[%s3018_s1 + $0x16] ss:$0 sm:$0xff] }
 0x170   : > { %1001 = vrot.lane.b32.xlu0 %v2414_v50, %s2053_s4  ;;  %988 = vrot.lane.b32.xlu1 %v2430_v56, %s2052_s3 }
 0x171   : > { %v509_v13 = vadd.f32 %v507_v5, %v494_v9  ;;  %v495_v18 = vadd.f32 %v493_v10, %v480_v12  ;;  %v1805_v12 = vld [vmem:[%s3018_s1 + $0x1d] ss:$0 sm:$0xff] }
 0x172   : > { %v504_v16 = vpop.permute.xlu1 %503  ;;  %v517_v17 = vpop.permute.xlu0 %516 }
 0x173   : > { %v522_v11 = vmul.f32 %v1796_v3, %v517_v17  ;;  %v508_v14 = vmul.f32 %v1795_v49, %v504_v16  ;;  %v533_v16 = vmul.f32 %v1797_v60, %v2268_v33  ;;  %v534_v33 = vmul.f32 %v1797_v60, %v2274_v34 }
 0x174   : > { %1016 = vrot.lane.b32.xlu0 %v2414_v50, %s2054_s7  ;;  %1003 = vrot.lane.b32.xlu1 %v2430_v56, %s2053_s4 }
 0x175   : > { %v524_v19 = vadd.f32 %v522_v11, %v509_v13  ;;  %v510_v17 = vadd.f32 %v508_v14, %v495_v18 }
 0x176   : > { %v519_v26 = vpop.permute.xlu1 %518  ;;  %v2472_v28 = vpop.permute.xlu0 %544 }
 0x177   : > { %v523_v20 = vmul.f32 %v1796_v3, %v519_v26  ;;  %v535_v24 = vadd.f32 %v533_v16, %v524_v19  ;;  %v550_v26 = vmul.f32 %v1798_v6, %v2472_v28 }
 0x178   : > { %1031 = vrot.lane.b32.xlu0 %v2414_v50, %s2055_s8  ;;  %1018 = vrot.lane.b32.xlu1 %v2430_v56, %s2054_s7 }
 0x179   : > { %v525_v25 = vadd.f32 %v523_v20, %v510_v17  ;;  %v552_v42 = vadd.f32 %v550_v26, %v535_v24 }
 0x17a   : > { %v2486_v31 = vpop.permute.xlu1 %546  ;;  %v560_v44 = vpop.permute.xlu0 %559 }
 0x17b   : > { %v565_v37 = vmul.f32 %v1799_v21, %v560_v44  ;;  %v536_v28 = vadd.f32 %v534_v33, %v525_v25  ;;  %v551_v43 = vmul.f32 %v1798_v6, %v2486_v31  ;;  %v1807_v6 = vld [vmem:[%s3018_s1 + $0x1f] ss:$0 sm:$0xff] }
 0x17c   : > { %1059 = vrot.lane.b32.xlu0 %v2490_v52, %s2050_s28  ;;  %1033 = vrot.lane.b32.xlu1 %v2430_v56, %s2055_s8 }
 0x17d   : > { %v567_v34 = vadd.f32 %v565_v37, %v552_v42  ;;  %v553_v58 = vadd.f32 %v551_v43, %v536_v28 }
 0x17e   : > { %v562_v59 = vpop.permute.xlu1 %561  ;;  %v575_v62 = vpop.permute.xlu0 %574 }
 0x17f   : > { %v580_v45 = vmul.f32 %v1800_v29, %v575_v62  ;;  %v566_v44 = vmul.f32 %v1799_v21, %v562_v59 }
 0x180   : > { %1061 = vrot.lane.b32.xlu1 %v2506_v2, %s2050_s28  ;;  %1074 = vrot.lane.b32.xlu0 %v2490_v52, %s2051_s30 }
 0x181   : > { %v582_v32 = vadd.f32 %v580_v45, %v567_v34  ;;  %v568_v59 = vadd.f32 %v566_v44, %v553_v58 }
 0x182   : > { %v577_v53 = vpop.permute.xlu1 %576  ;;  %v590_v8 = vpop.permute.xlu0 %589 }
 0x183   : > { %v595_v55 = vmul.f32 %v1801_v30, %v590_v8  ;;  %v581_v49 = vmul.f32 %v1800_v29, %v577_v53  ;;  %v1804_v53 = vld [vmem:[%s3018_s1 + $0x1c] ss:$0 sm:$0xff]  ;;  %v1809_v29 = vld [vmem:[%s3018_s1 + $0x21] ss:$0 sm:$0xff] }
 0x184   : > { %1076 = vrot.lane.b32.xlu1 %v2506_v2, %s2051_s30  ;;  %1089 = vrot.lane.b32.xlu0 %v2490_v52, %s2052_s3  ;;  %v636_v60 = vmul.f32 %v1804_v53, %v2296_v35  ;;  %v637_v17 = vmul.f32 %v1804_v53, %v2302_v36 }
 0x185   : > { %v597_v0 = vadd.f32 %v595_v55, %v582_v32  ;;  %v583_v4 = vadd.f32 %v581_v49, %v568_v59  ;;  %v1811_v49 = vld [vmem:[%s3018_s1 + $0x23] ss:$0 sm:$0xff] }
 0x186   : > { %v592_v7 = vpop.permute.xlu1 %591  ;;  %v605_v15 = vpop.permute.xlu0 %604 }
 0x187   : > { %v610_v62 = vmul.f32 %v1802_v51, %v605_v15  ;;  %v596_v1 = vmul.f32 %v1801_v30, %v592_v7  ;;  %v1806_v15 = vld [vmem:[%s3018_s1 + $0x1e] ss:$0 sm:$0xff] }
 0x188   : > { %1091 = vrot.lane.b32.xlu1 %v2506_v2, %s2052_s3  ;;  %1104 = vrot.lane.b32.xlu0 %v2490_v52, %s2053_s4 }
 0x189   : > { %v612_v5 = vadd.f32 %v610_v62, %v597_v0  ;;  %v598_v9 = vadd.f32 %v596_v1, %v583_v4  ;;  %v739_v4 = vmul.f32 %v1811_v49, %v2324_v40  ;;  %v740_v40 = vmul.f32 %v1811_v49, %v2339_v46  ;;  %v1816_v46 = vld [vmem:[%s3018_s1 + $0x28] ss:$0 sm:$0xff] }
 0x18a   : > { %v607_v22 = vpop.permute.xlu1 %606  ;;  %v620_v23 = vpop.permute.xlu0 %619 }
 0x18b   : > { %v625_v3 = vmul.f32 %v1803_v47, %v620_v23  ;;  %v611_v8 = vmul.f32 %v1802_v51, %v607_v22  ;;  %v1808_v22 = vld [vmem:[%s3018_s1 + $0x20] ss:$0 sm:$0xff] }
 0x18c   : > { %1106 = vrot.lane.b32.xlu1 %v2506_v2, %s2053_s4  ;;  %1119 = vrot.lane.b32.xlu0 %v2490_v52, %s2054_s7 }
 0x18d   : > { %v627_v10 = vadd.f32 %v625_v3, %v612_v5  ;;  %v613_v7 = vadd.f32 %v611_v8, %v598_v9  ;;  %v1813_v8 = vld [vmem:[%s3018_s1 + $0x25] ss:$0 sm:$0xff] }
 0x18e   : > { %v622_v39 = vpop.permute.xlu1 %621  ;;  %v648_v41 = vpop.permute.xlu0 %647 }
 0x18f   : > { %v626_v11 = vmul.f32 %v1803_v47, %v622_v39  ;;  %v638_v18 = vadd.f32 %v636_v60, %v627_v10  ;;  %v653_v20 = vmul.f32 %v1805_v12, %v648_v41  ;;  %v1810_v41 = vld [vmem:[%s3018_s1 + $0x22] ss:$0 sm:$0xff] }
 0x190   : > { %1121 = vrot.lane.b32.xlu1 %v2506_v2, %s2054_s7  ;;  %1134 = vrot.lane.b32.xlu0 %v2490_v52, %s2055_s8 }
 0x191   : > { %v628_v19 = vadd.f32 %v626_v11, %v613_v7  ;;  %v655_v24 = vadd.f32 %v653_v20, %v638_v18 }
 0x192   : > { %v650_v57 = vpop.permute.xlu1 %649  ;;  %v663_v31 = vpop.permute.xlu0 %662 }
 0x193   : > { %v668_v21 = vmul.f32 %v1806_v15, %v663_v31  ;;  %v639_v23 = vadd.f32 %v637_v17, %v628_v19  ;;  %v654_v25 = vmul.f32 %v1805_v12, %v650_v57 }
 0x194   : > { %1136 = vrot.lane.b32.xlu1 %v2506_v2, %s2055_s8  ;;  %1162 = vrot.lane.b32.xlu0 %v2558_v63, %s2050_s28 }
 0x195   : > { %v670_v37 = vadd.f32 %v668_v21, %v655_v24  ;;  %v656_v28 = vadd.f32 %v654_v25, %v639_v23 }
 0x196   : > { %v665_v48 = vpop.permute.xlu1 %664  ;;  %v678_v54 = vpop.permute.xlu0 %677 }
 0x197   : > { %v683_v26 = vmul.f32 %v1807_v6, %v678_v54  ;;  %v669_v30 = vmul.f32 %v1806_v15, %v665_v48  ;;  %v2612_v48 = vld [vmem:[#allocation2 + $0x1b] sm:$0xff]  ;;  %v1812_v54 = vld [vmem:[%s3018_s1 + $0x24] ss:$0 sm:$0xff]  ;;  %v1815_v15 = vld [vmem:[%s3018_s1 + $0x27] ss:$0 sm:$0xff] }
 0x198   : > { %1164 = vrot.lane.b32.xlu1 %v2564_v61, %s2050_s28  ;;  %1177 = vrot.lane.b32.xlu0 %v2558_v63, %s2051_s30 }
 0x199   : > { %v685_v42 = vadd.f32 %v683_v26, %v670_v37  ;;  %v671_v44 = vadd.f32 %v669_v30, %v656_v28 }
 0x19a   : > { %v680_v13 = vpop.permute.xlu1 %679  ;;  %v693_v14 = vpop.permute.xlu0 %692 }
 0x19b   : > { %v698_v39 = vmul.f32 %v1808_v22, %v693_v14  ;;  %v684_v43 = vmul.f32 %v1807_v6, %v680_v13  ;;  %v2625_v13 = vld [vmem:[#allocation2 + $0x23] sm:$0xff] }
 0x19c   : > { %1179 = vrot.lane.b32.xlu1 %v2564_v61, %s2051_s30  ;;  %1192 = vrot.lane.b32.xlu0 %v2558_v63, %s2052_s3  ;;  %v1814_v14 = vld [vmem:[%s3018_s1 + $0x26] ss:$0 sm:$0xff] }
 0x19d   : > { %v700_v55 = vadd.f32 %v698_v39, %v685_v42  ;;  %v686_v31 = vadd.f32 %v684_v43, %v671_v44  ;;  %v1818_v39 = vld [vmem:[%s3018_s1 + $0x2a] ss:$0 sm:$0xff] }
 0x19e   : > { %v695_v16 = vpop.permute.xlu1 %694  ;;  %v708_v35 = vpop.permute.xlu0 %707  ;;  %v842_v44 = vmul.f32 %v1818_v39, %v2380_v27  ;;  %v843_v27 = vmul.f32 %v1818_v39, %v2386_v38 }
 0x19f   : > { %v713_v45 = vmul.f32 %v1809_v29, %v708_v35  ;;  %v699_v47 = vmul.f32 %v1808_v22, %v695_v16 }
 0x1a0   : > { %1194 = vrot.lane.b32.xlu1 %v2564_v61, %s2052_s3  ;;  %1207 = vrot.lane.b32.xlu0 %v2558_v63, %s2053_s4 }
 0x1a1   : > { %v715_v58 = vadd.f32 %v713_v45, %v700_v55  ;;  %v701_v0 = vadd.f32 %v699_v47, %v686_v31 }
 0x1a2   : > { %v710_v36 = vpop.permute.xlu1 %709  ;;  %v723_v33 = vpop.permute.xlu0 %722 }
 0x1a3   : > { %v728_v57 = vmul.f32 %v1810_v41, %v723_v33  ;;  %v714_v32 = vmul.f32 %v1809_v29, %v710_v36  ;;  %v1817_v36 = vld [vmem:[%s3018_s1 + $0x29] ss:$0 sm:$0xff] }
 0x1a4   : > { %1209 = vrot.lane.b32.xlu1 %v2564_v61, %s2053_s4  ;;  %1222 = vrot.lane.b32.xlu0 %v2558_v63, %s2054_s7 }
 0x1a5   : > { %v730_v1 = vadd.f32 %v728_v57, %v715_v58  ;;  %v716_v5 = vadd.f32 %v714_v32, %v701_v0 }
 0x1a6   : > { %v725_v51 = vpop.permute.xlu1 %724  ;;  %v751_v34 = vpop.permute.xlu0 %750 }
 0x1a7   : > { %v729_v3 = vmul.f32 %v1810_v41, %v725_v51  ;;  %v741_v10 = vadd.f32 %v739_v4, %v730_v1  ;;  %v756_v12 = vmul.f32 %v1812_v54, %v751_v34  ;;  %v1819_v34 = vld [vmem:[%s3018_s1 + $0x2b] ss:$0 sm:$0xff] }
 0x1a8   : > { %1224 = vrot.lane.b32.xlu1 %v2564_v61, %s2054_s7  ;;  %1237 = vrot.lane.b32.xlu0 %v2558_v63, %s2055_s8 }
 0x1a9   : > { %v731_v11 = vadd.f32 %v729_v3, %v716_v5  ;;  %v758_v20 = vadd.f32 %v756_v12, %v741_v10 }
 0x1aa   : > { %v753_v62 = vpop.permute.xlu1 %752  ;;  %v766_v59 = vpop.permute.xlu0 %765 }
 0x1ab   : > { %v771_v60 = vmul.f32 %v1813_v8, %v766_v59  ;;  %v742_v19 = vadd.f32 %v740_v40, %v731_v11  ;;  %v757_v6 = vmul.f32 %v1812_v54, %v753_v62  ;;  %v1820_v59 = vld [vmem:[%s3018_s1 + $0x2c] ss:$0 sm:$0xff] }
 0x1ac   : > { %1239 = vrot.lane.b32.xlu1 %v2564_v61, %s2055_s8  ;;  %1265 = vrot.lane.b32.xlu0 %v2612_v48, %s2050_s28 }
 0x1ad   : > { %v773_v35 = vadd.f32 %v771_v60, %v758_v20  ;;  %v759_v24 = vadd.f32 %v757_v6, %v742_v19  ;;  %v2680_v60 = vld [vmem:[#allocation2 + $0x24] sm:$0xff] }
 0x1ae   : > { %v768_v53 = vpop.permute.xlu1 %767  ;;  %v781_v9 = vpop.permute.xlu0 %780 }
 0x1af   : > { %v786_v16 = vmul.f32 %v1814_v14, %v781_v9  ;;  %v772_v17 = vmul.f32 %v1813_v8, %v768_v53  ;;  %v2671_v53 = vld [vmem:[#allocation2 + $0x1c] sm:$0xff]  ;;  %v1821_v9 = vld [vmem:[%s3018_s1 + $0x2d] ss:$0 sm:$0xff] }
 0x1b0   : > { %1267 = vrot.lane.b32.xlu1 %v2625_v13, %s2050_s28  ;;  %1280 = vrot.lane.b32.xlu0 %v2612_v48, %s2051_s30 }
 0x1b1   : > { %v788_v25 = vadd.f32 %v786_v16, %v773_v35  ;;  %v774_v33 = vadd.f32 %v772_v17, %v759_v24 }
 0x1b2   : > { %v783_v7 = vpop.permute.xlu1 %782  ;;  %v796_v18 = vpop.permute.xlu0 %795 }
 0x1b3   : > { %v801_v21 = vmul.f32 %v1815_v15, %v796_v18  ;;  %v787_v26 = vmul.f32 %v1814_v14, %v783_v7  ;;  %v1822_v7 = vld [vmem:[%s3018_s1 + $0x2e] ss:$0 sm:$0xff] }
 0x1b4   : > { %1282 = vrot.lane.b32.xlu1 %v2625_v13, %s2051_s30  ;;  %1295 = vrot.lane.b32.xlu0 %v2612_v48, %s2052_s3 }
 0x1b5   : > { %v803_v37 = vadd.f32 %v801_v21, %v788_v25  ;;  %v789_v42 = vadd.f32 %v787_v26, %v774_v33  ;;  %v1824_v25 = vld [vmem:[%s3018_s1 + $0x30] ss:$0 sm:$0xff]  ;;  %v1825_v33 = vld [vmem:[%s3018_s1 + $0x31] ss:$0 sm:$0xff] }
 0x1b6   : > { %v798_v22 = vpop.permute.xlu1 %797  ;;  %v811_v23 = vpop.permute.xlu0 %810 }
 0x1b7   : > { %v816_v29 = vmul.f32 %v1816_v46, %v811_v23  ;;  %v802_v30 = vmul.f32 %v1815_v15, %v798_v22 }
 0x1b8   : > { %1297 = vrot.lane.b32.xlu1 %v2625_v13, %s2052_s3  ;;  %1310 = vrot.lane.b32.xlu0 %v2612_v48, %s2053_s4 }
 0x1b9   : > { %v818_v43 = vadd.f32 %v816_v29, %v803_v37  ;;  %v804_v55 = vadd.f32 %v802_v30, %v789_v42  ;;  %v945_v42 = vmul.f32 %v1825_v33, %v2414_v50 }
 0x1ba   : > { %v813_v41 = vpop.permute.xlu1 %812  ;;  %v826_v28 = vpop.permute.xlu0 %825 }
 0x1bb   : > { %v817_v45 = vmul.f32 %v1816_v46, %v813_v41  ;;  %v831_v51 = vmul.f32 %v1817_v36, %v826_v28  ;;  %v1823_v46 = vld [vmem:[%s3018_s1 + $0x2f] ss:$0 sm:$0xff]  ;;  %v1826_v41 = vld [vmem:[%s3018_s1 + $0x32] ss:$0 sm:$0xff] }
 0x1bc   : > { %1312 = vrot.lane.b32.xlu1 %v2625_v13, %s2053_s4  ;;  %1325 = vrot.lane.b32.xlu0 %v2612_v48, %s2054_s7 }
 0x1bd   : > { %v833_v47 = vadd.f32 %v831_v51, %v818_v43  ;;  %v819_v58 = vadd.f32 %v817_v45, %v804_v55 }
 0x1be   : > { %v828_v57 = vpop.permute.xlu1 %827  ;;  %v854_v31 = vpop.permute.xlu0 %853 }
 0x1bf   : > { %v844_v32 = vadd.f32 %v842_v44, %v833_v47  ;;  %v832_v49 = vmul.f32 %v1817_v36, %v828_v57  ;;  %v859_v62 = vmul.f32 %v1819_v34, %v854_v31  ;;  %v1827_v47 = vld [vmem:[%s3018_s1 + $0x33] ss:$0 sm:$0xff]  ;;  %v946_v57 = vmul.f32 %v1825_v33, %v2430_v56 }
 0x1c0   : > { %1327 = vrot.lane.b32.xlu1 %v2625_v13, %s2054_s7  ;;  %1340 = vrot.lane.b32.xlu0 %v2612_v48, %s2055_s8 }
 0x1c1   : > { %v834_v0 = vadd.f32 %v832_v49, %v819_v58  ;;  %v861_v1 = vadd.f32 %v859_v62, %v844_v32 }
 0x1c2   : > { %v856_v3 = vpop.permute.xlu1 %855  ;;  %v869_v54 = vpop.permute.xlu0 %868 }
 0x1c3   : > { %v845_v4 = vadd.f32 %v843_v27, %v834_v0  ;;  %v860_v5 = vmul.f32 %v1819_v34, %v856_v3  ;;  %v874_v8 = vmul.f32 %v1820_v59, %v869_v54  ;;  %v2722_v27 = vld [vmem:[#allocation2 + $0x1d] sm:$0xff]  ;;  %v1828_v0 = vld [vmem:[%s3018_s1 + $0x34] ss:$0 sm:$0xff] }
 0x1c4   : > { %1342 = vrot.lane.b32.xlu1 %v2625_v13, %s2055_s8  ;;  %1368 = vrot.lane.b32.xlu0 %v2671_v53, %s2050_s28 }
 0x1c5   : > { %v862_v38 = vadd.f32 %v860_v5, %v845_v4  ;;  %v876_v10 = vadd.f32 %v874_v8, %v861_v1  ;;  %v2731_v8 = vld [vmem:[#allocation2 + $0x25] sm:$0xff] }
 0x1c6   : > { %v871_v11 = vpop.permute.xlu1 %870  ;;  %v884_v12 = vpop.permute.xlu0 %883 }
 0x1c7   : > { %v875_v14 = vmul.f32 %v1820_v59, %v871_v11  ;;  %v889_v40 = vmul.f32 %v1821_v9, %v884_v12 }
 0x1c8   : > { %1370 = vrot.lane.b32.xlu1 %v2680_v60, %s2050_s28  ;;  %1383 = vrot.lane.b32.xlu0 %v2671_v53, %s2051_s30 }
 0x1c9   : > { %v877_v15 = vadd.f32 %v875_v14, %v862_v38  ;;  %v891_v18 = vadd.f32 %v889_v40, %v876_v10 }
 0x1ca   : > { %v886_v19 = vpop.permute.xlu1 %885  ;;  %v899_v20 = vpop.permute.xlu0 %898 }
 0x1cb   : > { %v890_v6 = vmul.f32 %v1821_v9, %v886_v19  ;;  %v904_v16 = vmul.f32 %v1822_v7, %v899_v20  ;;  %v1829_v9 = vld [vmem:[%s3018_s1 + $0x35] ss:$0 sm:$0xff] }
 0x1cc   : > { %1385 = vrot.lane.b32.xlu1 %v2680_v60, %s2051_s30  ;;  %1398 = vrot.lane.b32.xlu0 %v2671_v53, %s2052_s3 }
 0x1cd   : > { %v892_v35 = vadd.f32 %v890_v6, %v877_v15  ;;  %v906_v17 = vadd.f32 %v904_v16, %v891_v18 }
 0x1ce   : > { %v901_v21 = vpop.permute.xlu1 %900  ;;  %v914_v22 = vpop.permute.xlu0 %913 }
 0x1cf   : > { %v905_v23 = vmul.f32 %v1822_v7, %v901_v21  ;;  %v919_v24 = vmul.f32 %v1823_v46, %v914_v22 }
 0x1d0   : > { %1400 = vrot.lane.b32.xlu1 %v2680_v60, %s2052_s3  ;;  %1413 = vrot.lane.b32.xlu0 %v2671_v53, %s2053_s4 }
 0x1d1   : > { %v907_v26 = vadd.f32 %v905_v23, %v892_v35  ;;  %v921_v29 = vadd.f32 %v919_v24, %v906_v17  ;;  %v2756_v23 = vld [vmem:[#allocation2 + $0x1e] sm:$0xff] }
 0x1d2   : > { %v916_v36 = vpop.permute.xlu1 %915  ;;  %v929_v37 = vpop.permute.xlu0 %928 }
 0x1d3   : > { %v920_v30 = vmul.f32 %v1823_v46, %v916_v36  ;;  %v934_v39 = vmul.f32 %v1824_v25, %v929_v37 }
 0x1d4   : > { %1415 = vrot.lane.b32.xlu1 %v2680_v60, %s2053_s4  ;;  %1428 = vrot.lane.b32.xlu0 %v2671_v53, %s2054_s7 }
 0x1d5   : > { %v922_v28 = vadd.f32 %v920_v30, %v907_v26  ;;  %v936_v43 = vadd.f32 %v934_v39, %v921_v29  ;;  %v2762_v26 = vld [vmem:[#allocation2 + $0x26] sm:$0xff] }
 0x1d6   : > { %v931_v45 = vpop.permute.xlu1 %930  ;;  %v957_v51 = vpop.permute.xlu0 %956 }
 0x1d7   : > { %v947_v34 = vadd.f32 %v945_v42, %v936_v43  ;;  %v935_v44 = vmul.f32 %v1824_v25, %v931_v45  ;;  %v962_v55 = vmul.f32 %v1826_v41, %v957_v51  ;;  %v1830_v42 = vld [vmem:[%s3018_s1 + $0x36] ss:$0 sm:$0xff]  ;;  %v1831_v43 = vld [vmem:[%s3018_s1 + $0x37] ss:$0 sm:$0xff] }
 0x1d8   : > { %1430 = vrot.lane.b32.xlu1 %v2680_v60, %s2054_s7  ;;  %1443 = vrot.lane.b32.xlu0 %v2671_v53, %s2055_s8 }
 0x1d9   : > { %v937_v31 = vadd.f32 %v935_v44, %v922_v28  ;;  %v964_v50 = vadd.f32 %v962_v55, %v947_v34 }
 0x1da   : > { %v959_v58 = vpop.permute.xlu1 %958  ;;  %v972_v32 = vpop.permute.xlu0 %971 }
 0x1db   : > { %v948_v49 = vadd.f32 %v946_v57, %v937_v31  ;;  %v963_v62 = vmul.f32 %v1826_v41, %v959_v58  ;;  %v977_v59 = vmul.f32 %v1827_v47, %v972_v32 }
 0x1dc   : > { %1445 = vrot.lane.b32.xlu1 %v2680_v60, %s2055_s8  ;;  %1471 = vrot.lane.b32.xlu0 %v2722_v27, %s2050_s28 }
 0x1dd   : > { %v965_v56 = vadd.f32 %v963_v62, %v948_v49  ;;  %v979_v1 = vadd.f32 %v977_v59, %v964_v50  ;;  %v1832_v50 = vld [vmem:[%s3018_s1 + $0x38] ss:$0 sm:$0xff]  ;;  %v1833_v49 = vld [vmem:[%s3018_s1 + $0x39] ss:$0 sm:$0xff] }
 0x1de   : > { %v974_v3 = vpop.permute.xlu1 %973  ;;  %v987_v54 = vpop.permute.xlu0 %986 }
 0x1df   : > { %v978_v4 = vmul.f32 %v1827_v47, %v974_v3  ;;  %v992_v5 = vmul.f32 %v1828_v0, %v987_v54 }
 0x1e0   : > { %1473 = vrot.lane.b32.xlu1 %v2731_v8, %s2050_s28  ;;  %1486 = vrot.lane.b32.xlu0 %v2722_v27, %s2051_s30 }
 0x1e1   : > { %v980_v38 = vadd.f32 %v978_v4, %v965_v56  ;;  %v994_v10 = vadd.f32 %v992_v5, %v979_v1  ;;  %v1048_v56 = vmul.f32 %v1832_v50, %v2490_v52  ;;  %v1834_v1 = vld [vmem:[%s3018_s1 + $0x3a] ss:$0 sm:$0xff]  ;;  %v1835_v5 = vld [vmem:[%s3018_s1 + $0x3b] ss:$0 sm:$0xff]  ;;  %v1836_v52 = vld [vmem:[%s3018_s1 + $0x3c] ss:$0 sm:$0xff] }
 0x1e2   : > { %v989_v11 = vpop.permute.xlu1 %988  ;;  %v1002_v12 = vpop.permute.xlu0 %1001 }
 0x1e3   : > { %v993_v14 = vmul.f32 %v1828_v0, %v989_v11  ;;  %v1007_v40 = vmul.f32 %v1829_v9, %v1002_v12 }
 0x1e4   : > { %1488 = vrot.lane.b32.xlu1 %v2731_v8, %s2051_s30  ;;  %1501 = vrot.lane.b32.xlu0 %v2722_v27, %s2052_s3 }
 0x1e5   : > { %v995_v7 = vadd.f32 %v993_v14, %v980_v38  ;;  %v1009_v15 = vadd.f32 %v1007_v40, %v994_v10  ;;  %v1049_v10 = vmul.f32 %v1832_v50, %v2506_v2  ;;  %v1838_v2 = vld [vmem:[%s3018_s1 + $0x3e] ss:$0 sm:$0xff] }
 0x1e6   : > { %v1004_v18 = vpop.permute.xlu1 %1003  ;;  %v1017_v19 = vpop.permute.xlu0 %1016 }
 0x1e7   : > { %v1008_v20 = vmul.f32 %v1829_v9, %v1004_v18  ;;  %v1022_v34 = vmul.f32 %v1830_v42, %v1017_v19 }
 0x1e8   : > { %1503 = vrot.lane.b32.xlu1 %v2731_v8, %s2052_s3  ;;  %1516 = vrot.lane.b32.xlu0 %v2722_v27, %s2053_s4 }
 0x1e9   : > { %v1010_v6 = vadd.f32 %v1008_v20, %v995_v7  ;;  %v1024_v57 = vadd.f32 %v1022_v34, %v1009_v15  ;;  %v1837_v15 = vld [vmem:[%s3018_s1 + $0x3d] ss:$0 sm:$0xff] }
 0x1ea   : > { %v1019_v16 = vpop.permute.xlu1 %1018  ;;  %v1032_v46 = vpop.permute.xlu0 %1031 }
 0x1eb   : > { %v1037_v44 = vmul.f32 %v1831_v43, %v1032_v46  ;;  %v1023_v31 = vmul.f32 %v1830_v42, %v1019_v16 }
 0x1ec   : > { %1518 = vrot.lane.b32.xlu1 %v2731_v8, %s2053_s4  ;;  %1531 = vrot.lane.b32.xlu0 %v2722_v27, %s2054_s7 }
 0x1ed   : > { %v1039_v58 = vadd.f32 %v1037_v44, %v1024_v57  ;;  %v1025_v0 = vadd.f32 %v1023_v31, %v1010_v6 }
 0x1ee   : > { %v1034_v35 = vpop.permute.xlu1 %1033  ;;  %v1060_v17 = vpop.permute.xlu0 %1059 }
 0x1ef   : > { %v1038_v32 = vmul.f32 %v1831_v43, %v1034_v35  ;;  %v1050_v3 = vadd.f32 %v1048_v56, %v1039_v58  ;;  %v1065_v4 = vmul.f32 %v1833_v49, %v1060_v17 }
 0x1f0   : > { %1533 = vrot.lane.b32.xlu1 %v2731_v8, %s2054_s7  ;;  %1546 = vrot.lane.b32.xlu0 %v2722_v27, %s2055_s8 }
 0x1f1   : > { %v1040_v54 = vadd.f32 %v1038_v32, %v1025_v0  ;;  %v1067_v14 = vadd.f32 %v1065_v4, %v1050_v3 }
 0x1f2   : > { %v1062_v21 = vpop.permute.xlu1 %1061  ;;  %v1075_v22 = vpop.permute.xlu0 %1074 }
 0x1f3   : > { %v1080_v11 = vmul.f32 %v1834_v1, %v1075_v22  ;;  %v1051_v12 = vadd.f32 %v1049_v10, %v1040_v54  ;;  %v1066_v40 = vmul.f32 %v1833_v49, %v1062_v21  ;;  %v1840_v49 = vld [vmem:[%s3018_s1 + $0x40] ss:$0 sm:$0xff] }
 0x1f4   : > { %1548 = vrot.lane.b32.xlu1 %v2731_v8, %s2055_s8  ;;  %1574 = vrot.lane.b32.xlu0 %v2756_v23, %s2050_s28 }
 0x1f5   : > { %v1082_v20 = vadd.f32 %v1080_v11, %v1067_v14  ;;  %v1068_v46 = vadd.f32 %v1066_v40, %v1051_v12  ;;  %v1844_v40 = vld [vmem:[%s3018_s1 + $0x44] ss:$0 sm:$0xff] }
 0x1f6   : > { %v1077_v24 = vpop.permute.xlu1 %1076  ;;  %v1090_v25 = vpop.permute.xlu0 %1089 }
 0x1f7   : > { %v1095_v7 = vmul.f32 %v1835_v5, %v1090_v25  ;;  %v1081_v6 = vmul.f32 %v1834_v1, %v1077_v24  ;;  %v1839_v24 = vld [vmem:[%s3018_s1 + $0x3f] ss:$0 sm:$0xff] }
 0x1f8   : > { %1576 = vrot.lane.b32.xlu1 %v2762_v26, %s2050_s28  ;;  %1589 = vrot.lane.b32.xlu0 %v2756_v23, %s2051_s30  ;;  %v1152_v4 = vmul.f32 %v1839_v24, %v2564_v61  ;;  %s161_s28 = scalar_lea.vmem [#allocation6], %s1769_s6 }
 0x1f9   : > { %v1097_v35 = vadd.f32 %v1095_v7, %v1082_v20  ;;  %v1083_v42 = vadd.f32 %v1081_v6, %v1068_v46 }
 0x1fa   : > { %v1092_v29 = vpop.permute.xlu1 %1091  ;;  %v1105_v36 = vpop.permute.xlu0 %1104 }
 0x1fb   : > { %v1110_v16 = vmul.f32 %v1836_v52, %v1105_v36  ;;  %v1096_v17 = vmul.f32 %v1835_v5, %v1092_v29 }
 0x1fc   : > { %1591 = vrot.lane.b32.xlu1 %v2762_v26, %s2051_s30  ;;  %1604 = vrot.lane.b32.xlu0 %v2756_v23, %s2052_s3  ;;  %s1688_s30 = sshll.u32 %s161_s28, 4  ;;  %s2973_s30 = int_to_ptr.vmem [resolvable:$true] %s1688_s30 }
 0x1fd   : > { %v1112_v43 = vadd.f32 %v1110_v16, %v1097_v35  ;;  %v1098_v57 = vadd.f32 %v1096_v17, %v1083_v42  ;;  %s1977_s16 = scalar_lea.vmem %s2973_s30, 256  ;;  %p1984_p8 = scmp.lt.s32.totalorder %s2973_s30, %s1982_s17 }
 0x1fe   : > { %v1107_v33 = vpop.permute.xlu1 %1106  ;;  %v1120_v37 = vpop.permute.xlu0 %1119  ;;  %p1978_p6 = scmp.ne.s32.totalorder %s2973_s30, %s1977_s16 }
 0x1ff   : > { %v1125_v22 = vmul.f32 %v1837_v15, %v1120_v37  ;;  %v1111_v34 = vmul.f32 %v1836_v52, %v1107_v33  ;;  %v1151_v33 = vmul.f32 %v1839_v24, %v2558_v63  ;;  %v1843_v63 = vld [vmem:[%s3018_s1 + $0x43] ss:$0 sm:$0xff] }
 0x200   : > { %1606 = vrot.lane.b32.xlu1 %v2762_v26, %s2052_s3  ;;  %1619 = vrot.lane.b32.xlu0 %v2756_v23, %s2053_s4  ;;  %p1979_p12 = pnand %p1978_p6, %p3026_p11 }
 0x201   : > { %v1127_v31 = vadd.f32 %v1125_v22, %v1112_v43  ;;  %v1113_v32 = vadd.f32 %v1111_v34, %v1098_v57 }
 0x202   : > { %v1122_v30 = vpop.permute.xlu1 %1121  ;;  %v1135_v39 = vpop.permute.xlu0 %1134  ;;  %p1980_p13 = pneg %p1979_p12 }
 0x203   : > { %v1140_v44 = vmul.f32 %v1838_v2, %v1135_v39  ;;  %v1126_v50 = vmul.f32 %v1837_v15, %v1122_v30  ;;  %v1841_v30 = vld [vmem:[%s3018_s1 + $0x41] ss:$0 sm:$0xff]  ;;  %v1845_v15 = vld [vmem:[%s3018_s1 + $0x45] ss:$0 sm:$0xff] }
 0x204   : > { %1621 = vrot.lane.b32.xlu1 %v2762_v26, %s2053_s4  ;;  %1634 = vrot.lane.b32.xlu0 %v2756_v23, %s2054_s7  ;;  %s2971_s4 = scalar_lea.hbm %s3019_s2, %s1880_s20 }
 0x205   : > { %v1142_v29 = vadd.f32 %v1140_v44, %v1127_v31  ;;  %v1128_v0 = vadd.f32 %v1126_v50, %v1113_v32  ;;  %v1846_v44 = vld [vmem:[%s3018_s1 + $0x46] ss:$0 sm:$0xff] }
 0x206   : > { %v1137_v41 = vpop.permute.xlu1 %1136  ;;  %v2780_v28 = vpop.permute.xlu0 %1162  ;;  %v1254_v24 = vmul.f32 %v1846_v44, %v2612_v48  ;;  %v1850_v48 = vld [vmem:[%s3018_s1 + $0x4a] ss:$0 sm:$0xff] }
 0x207   : > { %v1141_v37 = vmul.f32 %v1838_v2, %v1137_v41  ;;  %v1153_v1 = vadd.f32 %v1151_v33, %v1142_v29  ;;  %v1168_v54 = vmul.f32 %v1840_v49, %v2780_v28  ;;  %v1842_v41 = vld [vmem:[%s3018_s1 + $0x42] ss:$0 sm:$0xff]  ;;  %v1255_v33 = vmul.f32 %v1846_v44, %v2625_v13  ;;  %v1852_v13 = vld [vmem:[%s3018_s1 + $0x4c] ss:$0 sm:$0xff]  ;;  %v1856_v44 = vld [vmem:[%s3018_s1 + $0x50] ss:$0 sm:$0xff] }
 0x208   : > { %1636 = vrot.lane.b32.xlu1 %v2762_v26, %s2054_s7  ;;  %1649 = vrot.lane.b32.xlu0 %v2756_v23, %s2055_s8  ;;  %s1675_s7 = scalar_lea.sflag [#allocation5], %s2178_s27 }
 0x209   : > { %v1143_v3 = vadd.f32 %v1141_v37, %v1128_v0  ;;  %v1170_v12 = vadd.f32 %v1168_v54, %v1153_v1 }
 0x20a   : > { %v2792_v45 = vpop.permute.xlu1 %1164  ;;  %v2794_v51 = vpop.permute.xlu0 %1177 }
 0x20b   : > { %v1183_v5 = vmul.f32 %v1841_v30, %v2794_v51  ;;  %v1154_v52 = vadd.f32 %v1152_v4, %v1143_v3  ;;  %v1169_v14 = vmul.f32 %v1840_v49, %v2792_v45 }
 0x20c   : > { %1651 = vrot.lane.b32.xlu1 %v2762_v26, %s2055_s8  ;;  %s1983_s8 = scalar_lea.vmem %s1982_s17, 512 }
 0x20d   : > { %v1185_v7 = vadd.f32 %v1183_v5, %v1170_v12  ;;  %v1171_v16 = vadd.f32 %v1169_v14, %v1154_v52  ;;  %p1985_p10 = scmp.lt.s32.totalorder %s1983_s8, %s1977_s16 }
 0x20e   : > { %v2798_v55 = vpop.permute.xlu1 %1179  ;;  %v2800_v47 = vpop.permute.xlu0 %1192 }
 0x20f   : > { %v1198_v28 = vmul.f32 %v1842_v41, %v2800_v47  ;;  %v1184_v61 = vmul.f32 %v1841_v30, %v2798_v55  ;;  %p1986_p0 = por %p1985_p10, %p1984_p8 }
 0x211   : > { %v1200_v2 = vadd.f32 %v1198_v28, %v1185_v7  ;;  %v1186_v46 = vadd.f32 %v1184_v61, %v1171_v16  ;;  %p1987_p2 = pnand %p1986_p0, %p1980_p13 }
 0x212   : > { %v2808_v62 = vpop.permute.xlu1 %1194  ;;  %v2810_v59 = vpop.permute.xlu0 %1207 }
 0x213   : > { %v1213_v51 = vmul.f32 %v1843_v63, %v2810_v59  ;;  %v1199_v45 = vmul.f32 %v1842_v41, %v2808_v62 }
 0x215   : > { %v1215_v35 = vadd.f32 %v1213_v51, %v1200_v2  ;;  %v1201_v59 = vadd.f32 %v1199_v45, %v1186_v46 }
 0x216   : > { %v2819_v9 = vpop.permute.xlu1 %1209  ;;  %v2821_v38 = vpop.permute.xlu0 %1222 }
 0x217   : > { %v1228_v47 = vmul.f32 %v1844_v40, %v2821_v38  ;;  %v1214_v17 = vmul.f32 %v1843_v63, %v2819_v9  ;;  %v1847_v38 = vld [vmem:[%s3018_s1 + $0x47] ss:$0 sm:$0xff] }
 0x219   : > { %v1230_v43 = vadd.f32 %v1228_v47, %v1215_v35  ;;  %v1216_v57 = vadd.f32 %v1214_v17, %v1201_v59 }
 0x21a   : > { %v2830_v18 = vpop.permute.xlu1 %1224  ;;  %v1238_v19 = vpop.permute.xlu0 %1237 }
 0x21b   : > { %v1243_v22 = vmul.f32 %v1845_v15, %v1238_v19  ;;  %v1229_v34 = vmul.f32 %v1844_v40, %v2830_v18  ;;  %v1848_v18 = vld [vmem:[%s3018_s1 + $0x48] ss:$0 sm:$0xff] }
 0x21d   : > { %v1245_v31 = vadd.f32 %v1243_v22, %v1230_v43  ;;  %v1231_v19 = vadd.f32 %v1229_v34, %v1216_v57  ;;  %v1855_v22 = vld [vmem:[%s3018_s1 + $0x4f] ss:$0 sm:$0xff] }
 0x21e   : > { %v1240_v21 = vpop.permute.xlu1 %1239  ;;  %v2835_v25 = vpop.permute.xlu0 %1265 }
 0x21f   : > { %v1244_v62 = vmul.f32 %v1845_v15, %v1240_v21  ;;  %v1256_v29 = vadd.f32 %v1254_v24, %v1245_v31  ;;  %v1271_v37 = vmul.f32 %v1847_v38, %v2835_v25  ;;  %v1849_v21 = vld [vmem:[%s3018_s1 + $0x49] ss:$0 sm:$0xff]  ;;  %v1851_v25 = vld [vmem:[%s3018_s1 + $0x4b] ss:$0 sm:$0xff] }
 0x221   : > { %v1246_v32 = vadd.f32 %v1244_v62, %v1231_v19  ;;  %v1273_v1 = vadd.f32 %v1271_v37, %v1256_v29 }
 0x222   : > { %v2840_v36 = vpop.permute.xlu1 %1267  ;;  %v1281_v58 = vpop.permute.xlu0 %1280 }
 0x223   : > { %v1286_v30 = vmul.f32 %v1848_v18, %v1281_v58  ;;  %v1257_v3 = vadd.f32 %v1255_v33, %v1246_v32  ;;  %v1272_v54 = vmul.f32 %v1847_v38, %v2840_v36 }
 0x225   : > { %v1288_v63 = vadd.f32 %v1286_v30, %v1273_v1  ;;  %v1274_v58 = vadd.f32 %v1272_v54, %v1257_v3 }
 0x226   : > { %v1283_v39 = vpop.permute.xlu1 %1282  ;;  %v1296_v56 = vpop.permute.xlu0 %1295 }
 0x227   : > { %v1301_v41 = vmul.f32 %v1849_v21, %v1296_v56  ;;  %v1287_v52 = vmul.f32 %v1848_v18, %v1283_v39  ;;  %v1853_v39 = vld [vmem:[%s3018_s1 + $0x4d] ss:$0 sm:$0xff] }
 0x228   : > { %v1358_v57 = vmul.f32 %v1853_v39, %v2680_v60  ;;  %v1859_v60 = vld [vmem:[%s3018_s1 + $0x53] ss:$0 sm:$0xff] }
 0x229   : > { %v1303_v14 = vadd.f32 %v1301_v41, %v1288_v63  ;;  %v1289_v56 = vadd.f32 %v1287_v52, %v1274_v58 }
 0x22a   : > { %v1298_v10 = vpop.permute.xlu1 %1297  ;;  %v1311_v11 = vpop.permute.xlu0 %1310 }
 0x22b   : > { %v1316_v12 = vmul.f32 %v1850_v48, %v1311_v11  ;;  %v1302_v28 = vmul.f32 %v1849_v21, %v1298_v10  ;;  %v1854_v10 = vld [vmem:[%s3018_s1 + $0x4e] ss:$0 sm:$0xff] }
 0x22d   : > { %v1318_v61 = vadd.f32 %v1316_v12, %v1303_v14  ;;  %v1304_v16 = vadd.f32 %v1302_v28, %v1289_v56  ;;  %v1860_v12 = vld [vmem:[%s3018_s1 + $0x54] ss:$0 sm:$0xff]  ;;  %v1861_v28 = vld [vmem:[%s3018_s1 + $0x55] ss:$0 sm:$0xff] }
 0x22e   : > { %v1313_v20 = vpop.permute.xlu1 %1312  ;;  %v1326_v6 = vpop.permute.xlu0 %1325  ;;  %v1460_v56 = vmul.f32 %v1860_v12, %v2722_v27  ;;  %v1864_v27 = vld [vmem:[%s3018_s1 + $0x58] ss:$0 sm:$0xff] }
 0x22f   : > { %v1331_v40 = vmul.f32 %v1851_v25, %v1326_v6  ;;  %v1317_v51 = vmul.f32 %v1850_v48, %v1313_v20  ;;  %v1357_v20 = vmul.f32 %v1853_v39, %v2671_v53  ;;  %v1857_v53 = vld [vmem:[%s3018_s1 + $0x51] ss:$0 sm:$0xff] }
 0x231   : > { %v1333_v2 = vadd.f32 %v1331_v40, %v1318_v61  ;;  %v1319_v46 = vadd.f32 %v1317_v51, %v1304_v16  ;;  %v1862_v61 = vld [vmem:[%s3018_s1 + $0x56] ss:$0 sm:$0xff] }
 0x232   : > { %v1328_v55 = vpop.permute.xlu1 %1327  ;;  %v1341_v42 = vpop.permute.xlu0 %1340 }
 0x233   : > { %v1346_v15 = vmul.f32 %v1852_v13, %v1341_v42  ;;  %v1332_v45 = vmul.f32 %v1851_v25, %v1328_v55 }
 0x235   : > { %v1348_v35 = vadd.f32 %v1346_v15, %v1333_v2  ;;  %v1334_v6 = vadd.f32 %v1332_v45, %v1319_v46  ;;  %v1863_v2 = vld [vmem:[%s3018_s1 + $0x57] ss:$0 sm:$0xff] }
 0x236   : > { %v1343_v50 = vpop.permute.xlu1 %1342  ;;  %v1369_v9 = vpop.permute.xlu0 %1368 }
 0x237   : > { %v1347_v17 = vmul.f32 %v1852_v13, %v1343_v50  ;;  %v1359_v43 = vadd.f32 %v1357_v20, %v1348_v35  ;;  %v1374_v34 = vmul.f32 %v1854_v10, %v1369_v9  ;;  %v1858_v9 = vld [vmem:[%s3018_s1 + $0x52] ss:$0 sm:$0xff] }
 0x239   : > { %v1349_v59 = vadd.f32 %v1347_v17, %v1334_v6  ;;  %v1376_v50 = vadd.f32 %v1374_v34, %v1359_v43  ;;  %v1865_v6 = vld [vmem:[%s3018_s1 + $0x59] ss:$0 sm:$0xff] }
 0x23a   : > { %v1371_v49 = vpop.permute.xlu1 %1370  ;;  %v1384_v0 = vpop.permute.xlu0 %1383 }
 0x23b   : > { %v1389_v31 = vmul.f32 %v1855_v22, %v1384_v0  ;;  %v1360_v19 = vadd.f32 %v1358_v57, %v1349_v59  ;;  %v1375_v24 = vmul.f32 %v1854_v10, %v1371_v49 }
 0x23d   : > { %v1391_v32 = vadd.f32 %v1389_v31, %v1376_v50  ;;  %v1377_v33 = vadd.f32 %v1375_v24, %v1360_v19 }
 0x23e   : > { %v1386_v4 = vpop.permute.xlu1 %1385  ;;  %v1399_v5 = vpop.permute.xlu0 %1398 }
 0x23f   : > { %v1404_v18 = vmul.f32 %v1856_v44, %v1399_v5  ;;  %v1390_v29 = vmul.f32 %v1855_v22, %v1386_v4 }
 0x241   : > { %v1406_v30 = vadd.f32 %v1404_v18, %v1391_v32  ;;  %v1392_v3 = vadd.f32 %v1390_v29, %v1377_v33  ;;  %v1867_v32 = vld [vmem:[%s3018_s1 + $0x5b] ss:$0 sm:$0xff]  ;;  %v1868_v33 = vld [vmem:[%s3018_s1 + $0x5c] ss:$0 sm:$0xff] }
 0x242   : > { %v1401_v7 = vpop.permute.xlu1 %1400  ;;  %v1414_v36 = vpop.permute.xlu0 %1413 }
 0x243   : > { %v1419_v37 = vmul.f32 %v1857_v53, %v1414_v36  ;;  %v1405_v48 = vmul.f32 %v1856_v44, %v1401_v7 }
 0x245   : > { %v1421_v49 = vadd.f32 %v1419_v37, %v1406_v30  ;;  %v1407_v63 = vadd.f32 %v1405_v48, %v1392_v3  ;;  %v1563_v48 = vmul.f32 %v1867_v32, %v2756_v23  ;;  %v1871_v23 = vld [vmem:[%s3018_s1 + $0x5f] ss:$0 sm:$0xff] }
 0x246   : > { %v1416_v11 = vpop.permute.xlu1 %1415  ;;  %v1429_v47 = vpop.permute.xlu0 %1428 }
 0x247   : > { %v1434_v1 = vmul.f32 %v1858_v9, %v1429_v47  ;;  %v1420_v54 = vmul.f32 %v1857_v53, %v1416_v11  ;;  %v1461_v11 = vmul.f32 %v1860_v12, %v2731_v8  ;;  %v1866_v8 = vld [vmem:[%s3018_s1 + $0x5a] ss:$0 sm:$0xff] }
 0x249   : > { %v1436_v52 = vadd.f32 %v1434_v1, %v1421_v49  ;;  %v1422_v13 = vadd.f32 %v1420_v54, %v1407_v63  ;;  %v1869_v1 = vld [vmem:[%s3018_s1 + $0x5d] ss:$0 sm:$0xff]  ;;  %v1564_v63 = vmul.f32 %v1867_v32, %v2762_v26 }
 0x24a   : > { %v1431_v55 = vpop.permute.xlu1 %1430  ;;  %v1444_v42 = vpop.permute.xlu0 %1443 }
 0x24b   : > { %v1449_v41 = vmul.f32 %v1859_v60, %v1444_v42  ;;  %v1435_v4 = vmul.f32 %v1858_v9, %v1431_v55 }
 0x24d   : > { %v1451_v58 = vadd.f32 %v1449_v41, %v1436_v52  ;;  %v1437_v36 = vadd.f32 %v1435_v4, %v1422_v13 }
 0x24e   : > { %v1446_v62 = vpop.permute.xlu1 %1445  ;;  %v1472_v38 = vpop.permute.xlu0 %1471 }
 0x24f   : > { %v1450_v14 = vmul.f32 %v1859_v60, %v1446_v62  ;;  %v1462_v15 = vadd.f32 %v1460_v56, %v1451_v58  ;;  %v1477_v16 = vmul.f32 %v1861_v28, %v1472_v38 }
 0x251   : > { %v1452_v51 = vadd.f32 %v1450_v14, %v1437_v36  ;;  %v1479_v46 = vadd.f32 %v1477_v16, %v1462_v15 }
 0x252   : > { %v1474_v21 = vpop.permute.xlu1 %1473  ;;  %v1487_v0 = vpop.permute.xlu0 %1486 }
 0x253   : > { %v1492_v47 = vmul.f32 %v1862_v61, %v1487_v0  ;;  %v1463_v35 = vadd.f32 %v1461_v11, %v1452_v51  ;;  %v1478_v17 = vmul.f32 %v1861_v28, %v1474_v21 }
 0x255   : > { %v1494_v55 = vadd.f32 %v1492_v47, %v1479_v46  ;;  %v1480_v43 = vadd.f32 %v1478_v17, %v1463_v35 }
 0x256   : > { %v1489_v25 = vpop.permute.xlu1 %1488  ;;  %v1502_v5 = vpop.permute.xlu0 %1501 }
 0x257   : > { %v1507_v10 = vmul.f32 %v1863_v2, %v1502_v5  ;;  %v1493_v42 = vmul.f32 %v1862_v61, %v1489_v25  ;;  %v1870_v5 = vld [vmem:[%s3018_s1 + $0x5e] ss:$0 sm:$0xff] }
 0x259   : > { %v1509_v34 = vadd.f32 %v1507_v10, %v1494_v55  ;;  %v1495_v62 = vadd.f32 %v1493_v42, %v1480_v43 }
 0x25a   : > { %v1504_v40 = vpop.permute.xlu1 %1503  ;;  %v1517_v7 = vpop.permute.xlu0 %1516 }
 0x25b   : > { %v1522_v59 = vmul.f32 %v1864_v27, %v1517_v7  ;;  %v1508_v44 = vmul.f32 %v1863_v2, %v1504_v40  ;;  %v1872_v40 = vld [vmem:[%s3018_s1 + $0x60] ss:$0 sm:$0xff] }
 0x25d   : > { %v1524_v38 = vadd.f32 %v1522_v59, %v1509_v34  ;;  %v1510_v24 = vadd.f32 %v1508_v44, %v1495_v62 }
 0x25e   : > { %v1519_v45 = vpop.permute.xlu1 %1518  ;;  %v1532_v39 = vpop.permute.xlu0 %1531 }
 0x25f   : > { %v1537_v57 = vmul.f32 %v1865_v6, %v1532_v39  ;;  %v1523_v50 = vmul.f32 %v1864_v27, %v1519_v45  ;;  %v1873_v45 = vld [vmem:[%s3018_s1 + $0x61] ss:$0 sm:$0xff] }
 0x261   : > { %v1539_v18 = vadd.f32 %v1537_v57, %v1524_v38  ;;  %v1525_v60 = vadd.f32 %v1523_v50, %v1510_v24 }
 0x262   : > { %v1534_v20 = vpop.permute.xlu1 %1533  ;;  %v1547_v22 = vpop.permute.xlu0 %1546 }
 0x263   : > { %v1552_v19 = vmul.f32 %v1866_v8, %v1547_v22  ;;  %v1538_v9 = vmul.f32 %v1865_v6, %v1534_v20 }
 0x265   : > { %v1554_v21 = vadd.f32 %v1552_v19, %v1539_v18  ;;  %v1540_v30 = vadd.f32 %v1538_v9, %v1525_v60 }
 0x266   : > { %v1549_v31 = vpop.permute.xlu1 %1548  ;;  %v1575_v53 = vpop.permute.xlu0 %1574 }
 0x267   : > { %v1553_v0 = vmul.f32 %v1866_v8, %v1549_v31  ;;  %v1565_v41 = vadd.f32 %v1563_v48, %v1554_v21  ;;  %v1580_v25 = vmul.f32 %v1868_v33, %v1575_v53 }
 0x269   : > { %v1555_v54 = vadd.f32 %v1553_v0, %v1540_v30  ;;  %v1582_v13 = vadd.f32 %v1580_v25, %v1565_v41 }
 0x26a   : > { %v1577_v29 = vpop.permute.xlu1 %1576  ;;  %v1590_v37 = vpop.permute.xlu0 %1589 }
 0x26b   : > { %v1595_v52 = vmul.f32 %v1869_v1, %v1590_v37  ;;  %v1566_v58 = vadd.f32 %v1564_v63, %v1555_v54  ;;  %v1581_v14 = vmul.f32 %v1868_v33, %v1577_v29 }
 0x26d   : > { %v1597_v7 = vadd.f32 %v1595_v52, %v1582_v13  ;;  %v1583_v51 = vadd.f32 %v1581_v14, %v1566_v58 }
 0x26e   : > { %v1592_v3 = vpop.permute.xlu1 %1591  ;;  %v1605_v49 = vpop.permute.xlu0 %1604 }
 0x26f   : > { %v1610_v28 = vmul.f32 %v1870_v5, %v1605_v49  ;;  %v1596_v36 = vmul.f32 %v1869_v1, %v1592_v3 }
 0x271   : > { %v1612_v15 = vadd.f32 %v1610_v28, %v1597_v7  ;;  %v1598_v39 = vadd.f32 %v1596_v36, %v1583_v51 }
 0x272   : > { %v1607_v4 = vpop.permute.xlu1 %1606  ;;  %v1620_v12 = vpop.permute.xlu0 %1619 }
 0x273   : > { %v1625_v56 = vmul.f32 %v1871_v23, %v1620_v12  ;;  %v1611_v16 = vmul.f32 %v1870_v5, %v1607_v4 }
 0x275   : > { %v1627_v11 = vadd.f32 %v1625_v56, %v1612_v15  ;;  %v1613_v35 = vadd.f32 %v1611_v16, %v1598_v39 }
 0x276   : > { %v1622_v61 = vpop.permute.xlu1 %1621  ;;  %v1635_v26 = vpop.permute.xlu0 %1634 }
 0x277   : > { %v1640_v2 = vmul.f32 %v1872_v40, %v1635_v26  ;;  %v1626_v47 = vmul.f32 %v1871_v23, %v1622_v61 }
 0x279   : > { %v1642_v17 = vadd.f32 %v1640_v2, %v1627_v11  ;;  %v1628_v20 = vadd.f32 %v1626_v47, %v1613_v35 }
 0x27a   : > { %v1637_v27 = vpop.permute.xlu1 %1636  ;;  %v1650_v46 = vpop.permute.xlu0 %1649 }
 0x27b   : > { %v1641_v10 = vmul.f32 %v1872_v40, %v1637_v27  ;;  %v1655_v6 = vmul.f32 %v1873_v45, %v1650_v46 }
 0x27d   : > { %v1657_v22 = vadd.f32 %v1655_v6, %v1642_v17  ;;  %v1643_v42 = vadd.f32 %v1641_v10, %v1628_v20 }
 0x27e   : > { %v1652_v55 = vpop.permute.xlu1 %1651 }
 0x27f   : > { %v1659_v59 = vsub.f32 0.0, %v1657_v22  ;;  %v1656_v8 = vmul.f32 %v1873_v45, %v1652_v55 }
 0x281   : > { %v1661_v43 = vmul.f32 1.442695, %v1659_v59  ;;  %v1658_v34 = vadd.f32 %v1656_v8, %v1643_v42 }
 0x283   : > { %1939 = vpow2.f32 %v1661_v43  ;;  %v1660_v44 = vsub.f32 0.0, %v1658_v34 }
 0x285   : > { %v1663_v57 = vmul.f32 1.442695, %v1660_v44 }
 0x287   : > { %1941 = vpow2.f32 %v1663_v57 }
 0x28d   : > { %v1940_v31 = vpop.eup %1939 }
 0x28e   : > { %v1665_v53 = vadd.f32 1.0, %v1940_v31 }
 0x290   : > { %1943 = vrcp.f32 %v1665_v53 }
 0x291   : > { %v1942_v62 = vpop.eup %1941 }
 0x292   : > { %v1666_v38 = vadd.f32 1.0, %v1942_v62 }
 0x294   : > { %1945 = vrcp.f32 %v1666_v38 }
 0x29a   : > { %v1944_v50 = vpop.eup %1943 }
 0x29b   : > { %1672 = vst.msk [vmem:[%s161_s28] sm:$0xff] %vm1671_vm3, %v1944_v50 }
 0x29e   : > { %v1946_v19 = vpop.eup %1945 }
 0x29f   : > { %1673 = vst.msk [vmem:[%s161_s28 + $0x8] sm:$0xff] %vm1671_vm3, %v1946_v19 }
 0x2a0   : > { %1990 = shalt.err (!%p1987_p2)
}
 0x2a1   : > { %s1991_s19 = scalar_lea.hbm %s2971_s4, 256  ;;  %s1995_s25 = scalar_lea.hbm %s3019_s2, 512 }
 0x2a2   : > { %p1992_p4 = scmp.ne.s32.totalorder %s2971_s4, %s1991_s19  ;;  %p1996_p9 = scmp.lt.u32.totalorder %s2971_s4, %s3019_s2 }
 0x2a3   : > { %p1997_p1 = scmp.lt.u32.totalorder %s1995_s25, %s1991_s19  ;;  %p1999_p6 = scmp.lt.u32.totalorder %s1991_s19, %s2971_s4 }
 0x2a4   : > { %p1993_p5 = pnand %p1992_p4, %p3026_p11 }
 0x2a5   : > { %p1998_p3 = por %p1997_p1, %p1996_p9 }
 0x2a6   : > { %p1994_p7 = pneg %p1993_p5 }
 0x2a7   : > { %p2000_p12 = por %p1999_p6, %p1998_p3 }
 0x2a9   : > { %p2001_p13 = pnand %p2000_p12, %p1994_p7 }
 0x2ab   : > { %2004 = shalt.err (!%p2001_p13)
}
 0x2ac   : > { %s2057_s5 = smov 128   ;;  %s2058_s6 = smov 8  }
 0x2ad   : > { %1883 = dma.vmem_to_hbm [thread:$0]  (%p3026_p11), %s2973_s30, 256, %s2971_s4, %s1675_s7, %s2057_s5, %s2057_s5, %s2058_s6  }
 0x2ae PF: > { %s1703_s20 = sand.u32 1, %s2031_s9   ;;  %p3027_p8 = scmp.ne.s32.totalorder %s3024_s22, 0 }
 0x2af   : > { %p3028_p10 = scmp.ge.s32.totalorder %s2043_s12, 2  ;;  %s1704_s28 = scalar_lea.sflag [#allocation5], %s1703_s20 }
 0x2b1   : > { %p1890_p0 = pnand %p3028_p10, %p3027_p8 }
 0x2b3   : > { %2026 = dma.done.wait (!%p1890_p0), %s1704_s28, 256  }
 0x2b4   : > { %2028 = vsyncadd (!%p1890_p0), %s1704_s28, 4294967040  ;;  %p15_p2 = scmp.ge.s32.totalorder %s2099_s15, 4   ;;  %s3029_s9 = smov %s2035_s10 }
 0x2b5   : > { %s3030_s10 = smov %s2039_s11  ;;  %s3031_s11 = smov %s2111_s18 }
 0x2b6   : > { %s3032_s12 = smov %s2099_s15  ;;  %17 = sbr.rel (!%p15_p2) target bundleno = 5 (0x5), region = 77 }
 0x2bd   :  { %1709 = vsyncpa [#allocation4], 1 }
 0x2be   :  { %1711 = vsyncpa [#allocation4 + $0x1], 1 }
 0x2bf   :  { %1712 = vsyncpa [#allocation5], 1 }
 0x2c0   :  { %1714 = vsyncpa [#allocation5 + $0x1], 1 }

</bundles_post_ra>
